<compile_context>
chip_gen: v7x
topology: tpu7x:2x2x1
jax: 0.10.0
libtpu: 0.0.40
codegen_flags: <defaults>
</compile_context>

<pallas_src>
import functools
import math

import jax
import jax.numpy as jnp
from jax import lax
from jax.experimental import pallas as pl
from jax.experimental.pallas import tpu as pltpu  # noqa: F401  (TPU backend)


# ----------------------------- Pallas kernels ------------------------------

def _ln_kernel(x_ref, g_ref, b_ref, o_ref, *, eps):
    """o = LayerNorm(x) * gamma + beta (per-row over hidden)."""
    x = x_ref[...]
    mu = jnp.mean(x, axis=-1, keepdims=True)
    var = jnp.mean((x - mu) * (x - mu), axis=-1, keepdims=True)
    inv = lax.rsqrt(var + eps)
    o_ref[...] = ((x - mu) * inv * g_ref[...] + b_ref[...]).astype(o_ref.dtype)


def _attn_block_kernel(h_ref, wqkv_ref, bqkv_ref, wo_ref, bo_ref, mask_ref,
                       g_ref, b_ref, o_ref, *, batch, seq, heads, head_dim, eps):
    """Fused: QKV proj -> per-head masked softmax attention -> out proj -> +res -> LN."""
    H = heads * head_dim
    x = h_ref[...]                                     # (B*S, H) f32
    x16 = x.astype(jnp.bfloat16)

    # Fused QKV projection (bf16 MXU, f32 accumulate).
    qkv = jnp.dot(x16, wqkv_ref[...], preferred_element_type=jnp.float32)
    qkv = qkv + bqkv_ref[...]                          # (B*S, 3H) f32
    q = qkv[:, 0 * H:1 * H]
    k = qkv[:, 1 * H:2 * H]
    v = qkv[:, 2 * H:3 * H]

    scale = 1.0 / math.sqrt(head_dim)
    wo = wo_ref[...]                                   # (H, H) bf16
    rows = []
    for bi in range(batch):                            # static, unrolled
        r0, r1 = bi * seq, (bi + 1) * seq
        qb, kb, vb = q[r0:r1, :], k[r0:r1, :], v[r0:r1, :]
        m = mask_ref[bi]                               # (1, S) additive mask
        acc = jnp.zeros((seq, H), jnp.float32)
        for hh in range(heads):                        # heads sliced on the lane axis
            lo, hi = hh * head_dim, (hh + 1) * head_dim
            qh, kh, vh = qb[:, lo:hi], kb[:, lo:hi], vb[:, lo:hi]
            # scores = q @ k^T (no transpose materialized), f32 softmax math
            s = lax.dot_general(qh, kh, (((1,), (1,)), ((), ())),
                                preferred_element_type=jnp.float32) * scale
            s = s + m
            s = s - jnp.max(s, axis=-1, keepdims=True)
            e = jnp.exp(s)
            p = e * pl.reciprocal(jnp.sum(e, axis=-1, keepdims=True), approx=True)
            ctx = jnp.dot(p.astype(jnp.bfloat16), vh.astype(jnp.bfloat16),
                          preferred_element_type=jnp.float32)          # (S, D)
            # fold the per-head output projection into the head loop (no concat of ctx)
            acc = acc + jnp.dot(ctx.astype(jnp.bfloat16), wo[lo:hi, :],
                                preferred_element_type=jnp.float32)     # (S, H)
        rows.append(acc)
    attn = jnp.concatenate(rows, axis=0) + bo_ref[...]  # (B*S, H)

    # residual + LayerNorm (f32)
    hres = attn + x
    mu = jnp.mean(hres, axis=-1, keepdims=True)
    var = jnp.mean((hres - mu) * (hres - mu), axis=-1, keepdims=True)
    inv = lax.rsqrt(var + eps)
    o_ref[...] = ((hres - mu) * inv * g_ref[...] + b_ref[...]).astype(o_ref.dtype)


def _ffn_block_kernel(h_ref, w1_ref, b1_ref, w2_ref, b2_ref, g_ref, b_ref, o_ref,
                      *, eps):
    """Fused: FFN (w1 + gelu + w2) -> residual add -> LayerNorm."""
    x = h_ref[...]                                     # (B*S, H) f32
    u = jnp.dot(x.astype(jnp.bfloat16), w1_ref[...],
                preferred_element_type=jnp.float32) + b1_ref[...]
    # exact (erf-based) gelu, as in HF BERT
    u = 0.5 * u * (1.0 + lax.erf(u * (1.0 / math.sqrt(2.0))))
    f = jnp.dot(u.astype(jnp.bfloat16), w2_ref[...],
                preferred_element_type=jnp.float32) + b2_ref[...]
    hres = f + x
    mu = jnp.mean(hres, axis=-1, keepdims=True)
    var = jnp.mean((hres - mu) * (hres - mu), axis=-1, keepdims=True)
    inv = lax.rsqrt(var + eps)
    o_ref[...] = ((hres - mu) * inv * g_ref[...] + b_ref[...]).astype(o_ref.dtype)


def _pool_cls_kernel(h_ref, wp_ref, bp_ref, wc_ref, bc_ref, o_ref, *, batch, seq):
    """Fused: take token-0 rows -> pooler tanh dense -> classifier (lane-padded)."""
    h = h_ref[...]                                     # (B*S, H)
    first = jnp.concatenate([h[bi * seq:bi * seq + 1, :] for bi in range(batch)],
                            axis=0)                    # (B, H)
    pooled = jnp.tanh(jnp.dot(first.astype(jnp.bfloat16), wp_ref[...],
                              preferred_element_type=jnp.float32) + bp_ref[...])
    logits = jnp.dot(pooled.astype(jnp.bfloat16), wc_ref[...],
                     preferred_element_type=jnp.float32) + bc_ref[...]
    o_ref[...] = logits.astype(o_ref.dtype)            # (B, 128) lane-dense store


# ----------------------------- pallas_call wrappers -------------------------

def layernorm(x, gamma2d, beta2d, eps=1e-12):
    M, H = x.shape
    return pl.pallas_call(
        functools.partial(_ln_kernel, eps=eps),
        out_shape=jax.ShapeDtypeStruct((M, H), jnp.float32),
        grid=(1,),
        in_specs=[
            pl.BlockSpec((M, H), lambda i: (0, 0)),
            pl.BlockSpec((1, H), lambda i: (0, 0)),
            pl.BlockSpec((1, H), lambda i: (0, 0)),
        ],
        out_specs=pl.BlockSpec((M, H), lambda i: (0, 0)),
    )(x, gamma2d, beta2d)


def attention_block(hidden, wqkv, bqkv, wo, bo, mask_add, gamma2d, beta2d,
                    *, batch, seq, heads, head_dim, eps=1e-12):
    M, H = hidden.shape
    return pl.pallas_call(
        functools.partial(_attn_block_kernel, batch=batch, seq=seq, heads=heads,
                          head_dim=head_dim, eps=eps),
        out_shape=jax.ShapeDtypeStruct((M, H), jnp.float32),
        grid=(1,),
        in_specs=[
            pl.BlockSpec((M, H), lambda i: (0, 0)),
            pl.BlockSpec((H, 3 * H), lambda i: (0, 0)),
            pl.BlockSpec((1, 3 * H), lambda i: (0, 0)),
            pl.BlockSpec((H, H), lambda i: (0, 0)),
            pl.BlockSpec((1, H), lambda i: (0, 0)),
            pl.BlockSpec((batch, 1, seq), lambda i: (0, 0, 0)),
            pl.BlockSpec((1, H), lambda i: (0, 0)),
            pl.BlockSpec((1, H), lambda i: (0, 0)),
        ],
        out_specs=pl.BlockSpec((M, H), lambda i: (0, 0)),
    )(hidden, wqkv, bqkv, wo, bo, mask_add, gamma2d, beta2d)


def ffn_block(hidden, w1, b1, w2, b2, gamma2d, beta2d, eps=1e-12):
    M, H = hidden.shape
    I = w1.shape[1]
    return pl.pallas_call(
        functools.partial(_ffn_block_kernel, eps=eps),
        out_shape=jax.ShapeDtypeStruct((M, H), jnp.float32),
        grid=(1,),
        in_specs=[
            pl.BlockSpec((M, H), lambda i: (0, 0)),
            pl.BlockSpec((H, I), lambda i: (0, 0)),
            pl.BlockSpec((1, I), lambda i: (0, 0)),
            pl.BlockSpec((I, H), lambda i: (0, 0)),
            pl.BlockSpec((1, H), lambda i: (0, 0)),
            pl.BlockSpec((1, H), lambda i: (0, 0)),
            pl.BlockSpec((1, H), lambda i: (0, 0)),
        ],
        out_specs=pl.BlockSpec((M, H), lambda i: (0, 0)),
    )(hidden, w1, b1, w2, b2, gamma2d, beta2d)


def pooler_classifier(hidden, wp, bp, wc_pad, bc_pad, *, batch, seq):
    M, H = hidden.shape
    NP = wc_pad.shape[1]
    return pl.pallas_call(
        functools.partial(_pool_cls_kernel, batch=batch, seq=seq),
        out_shape=jax.ShapeDtypeStruct((batch, NP), jnp.float32),
        grid=(1,),
        in_specs=[
            pl.BlockSpec((M, H), lambda i: (0, 0)),
            pl.BlockSpec((H, H), lambda i: (0, 0)),
            pl.BlockSpec((1, H), lambda i: (0, 0)),
            pl.BlockSpec((H, NP), lambda i: (0, 0)),
            pl.BlockSpec((1, NP), lambda i: (0, 0)),
        ],
        out_specs=pl.BlockSpec((batch, NP), lambda i: (0, 0)),
    )(hidden, wp, bp, wc_pad, bc_pad)


# ------------------------------ Parameters ---------------------------------

def init_params(key, *, vocab, hidden, layers, heads, inter, max_pos, out_dim):
    std = 0.02
    keys = iter(jax.random.split(key, 64))

    def w(shape):
        return (std * jax.random.normal(next(keys), shape)).astype(jnp.float32)

    zeros = lambda s: jnp.zeros(s, jnp.float32)
    ones = lambda s: jnp.ones(s, jnp.float32)

    params = {
        "word_emb": w((vocab, hidden)),
        "pos_emb": w((max_pos, hidden)),
        "type_emb": w((2, hidden)),
        "emb_ln_g": ones((hidden,)), "emb_ln_b": zeros((hidden,)),
        "layers": [],
        "pooler_w": w((hidden, hidden)), "pooler_b": zeros((hidden,)),
        "mlp_w": w((hidden, out_dim)), "mlp_b": zeros((out_dim,)),
    }
    for _ in range(layers):
        params["layers"].append({
            "wq": w((hidden, hidden)), "bq": zeros((hidden,)),
            "wk": w((hidden, hidden)), "bk": zeros((hidden,)),
            "wv": w((hidden, hidden)), "bv": zeros((hidden,)),
            "wo": w((hidden, hidden)), "bo": zeros((hidden,)),
            "ln1_g": ones((hidden,)), "ln1_b": zeros((hidden,)),
            "w1": w((hidden, inter)), "b1": zeros((inter,)),
            "w2": w((inter, hidden)), "b2": zeros((hidden,)),
            "ln2_g": ones((hidden,)), "ln2_b": zeros((hidden,)),
        })
    return params


def prepare_params(params, *, lane_pad=128):
    """One-time prep: fuse QKV weights, cast matmul weights to bf16, reshape biases
    to (1, N), pad the classifier to 128 output lanes."""
    H = params["word_emb"].shape[1]
    out_dim = params["mlp_w"].shape[1]
    bf16 = jnp.bfloat16

    prep = {
        "word_emb": params["word_emb"],
        "pos_emb": params["pos_emb"],
        "type_emb": params["type_emb"],
        "emb_ln_g": params["emb_ln_g"].reshape(1, H),
        "emb_ln_b": params["emb_ln_b"].reshape(1, H),
        "pooler_w": params["pooler_w"].astype(bf16),
        "pooler_b": params["pooler_b"].reshape(1, H),
        "mlp_w_pad": jnp.pad(params["mlp_w"],
                             ((0, 0), (0, lane_pad - out_dim))).astype(bf16),
        "mlp_b_pad": jnp.pad(params["mlp_b"], (0, lane_pad - out_dim)).reshape(1, lane_pad),
        "layers": [],
    }
    for lyr in params["layers"]:
        I = lyr["w1"].shape[1]
        prep["layers"].append({
            "wqkv": jnp.concatenate([lyr["wq"], lyr["wk"], lyr["wv"]], axis=1).astype(bf16),
            "bqkv": jnp.concatenate([lyr["bq"], lyr["bk"], lyr["bv"]]).reshape(1, 3 * H),
            "wo": lyr["wo"].astype(bf16), "bo": lyr["bo"].reshape(1, H),
            "ln1_g": lyr["ln1_g"].reshape(1, H), "ln1_b": lyr["ln1_b"].reshape(1, H),
            "w1": lyr["w1"].astype(bf16), "b1": lyr["b1"].reshape(1, I),
            "w2": lyr["w2"].astype(bf16), "b2": lyr["b2"].reshape(1, H),
            "ln2_g": lyr["ln2_g"].reshape(1, H), "ln2_b": lyr["ln2_b"].reshape(1, H),
        })
    return prep


# ------------------------------ Forward pass --------------------------------

def bert_classifier_forward(prep, input_ids, token_type_ids, attention_mask,
                            *, heads, out_dim):
    B, S = input_ids.shape
    H = prep["word_emb"].shape[1]
    D = H // heads

    # Embedding lookups / sum are XLA glue; LN is a Pallas kernel (no zeros residual).
    emb = (jnp.take(prep["word_emb"], input_ids, axis=0)
           + prep["pos_emb"][:S][None, :, :]
           + jnp.take(prep["type_emb"], token_type_ids, axis=0))
    hidden = layernorm(emb.reshape(B * S, H), prep["emb_ln_g"], prep["emb_ln_b"])

    # Additive mask, passed ONCE as (B, 1, S) — no per-head duplication.
    ext = (1.0 - attention_mask.astype(jnp.float32)) * -10000.0
    mask_add = ext[:, None, :]

    for lyr in prep["layers"]:
        hidden = attention_block(hidden, lyr["wqkv"], lyr["bqkv"], lyr["wo"],
                                 lyr["bo"], mask_add, lyr["ln1_g"], lyr["ln1_b"],
                                 batch=B, seq=S, heads=heads, head_dim=D)
        hidden = ffn_block(hidden, lyr["w1"], lyr["b1"], lyr["w2"], lyr["b2"],
                           lyr["ln2_g"], lyr["ln2_b"])

    # Pooler tanh(dense(token 0)) == res[1] of BertModel, then self.mlp(res[1]).
    logits_pad = pooler_classifier(hidden, prep["pooler_w"], prep["pooler_b"],
                                   prep["mlp_w_pad"], prep["mlp_b_pad"],
                                   batch=B, seq=S)
    return logits_pad[:, :out_dim]


# --------------------------------- Main -------------------------------------

if __name__ == "__main__":
    B, S, H = 2, 8, 32
    HEADS, INTER, LAYERS = 2, 64, 2
    VOCAB, MAX_POS, OUT_DIM = 100, 64, 3

    key = jax.random.PRNGKey(0)
    k_param, k_ids = jax.random.split(key)

    params = init_params(k_param, vocab=VOCAB, hidden=H, layers=LAYERS,
                         heads=HEADS, inter=INTER, max_pos=MAX_POS,
                         out_dim=OUT_DIM)
    prep = prepare_params(params)

    input_ids = jax.random.randint(k_ids, (B, S), 0, VOCAB, dtype=jnp.int32)
    token_type_ids = jnp.zeros((B, S), jnp.int32)
    attention_mask = jnp.ones((B, S), jnp.float32).at[1, 6:].set(0.0)  # pad last 2 tokens of ex.1

    fwd = jax.jit(functools.partial(bert_classifier_forward,
                                    heads=HEADS, out_dim=OUT_DIM))
    logits = fwd(prep, input_ids, token_type_ids, attention_mask)
    jax.block_until_ready(logits)
    assert logits.shape == (B, OUT_DIM)
    print("KERNEL_OK")
</pallas_src>

<mosaic_0001>
module attributes {stable_mosaic.version = 11 : i64} {
  func.func @_ln_kernel(%arg0: i32, %arg1: memref<16x32xf32, #tpu.memory_space<vmem>>, %arg2: memref<1x32xf32, #tpu.memory_space<vmem>>, %arg3: memref<1x32xf32, #tpu.memory_space<vmem>>, %arg4: memref<16x32xf32, #tpu.memory_space<vmem>>) attributes {dimension_semantics = [#tpu.dimension_semantics<arbitrary>], iteration_bounds = array<i64: 1>, scalar_prefetch = 0 : i64, scratch_operands = 0 : i64, tpu.core_type = #tpu.core_type<tc>, window_params = [{pipeline_mode = #tpu.pipeline_mode<synchronous>, transform_indices = @transform_0, window_bounds = array<i64: 16, 32>}, {pipeline_mode = #tpu.pipeline_mode<synchronous>, transform_indices = @transform_1, window_bounds = array<i64: 1, 32>}, {pipeline_mode = #tpu.pipeline_mode<synchronous>, transform_indices = @transform_2, window_bounds = array<i64: 1, 32>}, {pipeline_mode = #tpu.pipeline_mode<synchronous>, transform_indices = @transform_3, window_bounds = array<i64: 16, 32>}]} {
    %c0 = arith.constant 0 : index
    %c0_0 = arith.constant 0 : index
    %0 = vector.load %arg1[%c0, %c0_0] : memref<16x32xf32, #tpu.memory_space<vmem>>, vector<16x32xf32>
    %cst = arith.constant dense<0.000000e+00> : vector<16xf32>
    %1 = vector.multi_reduction <add>, %0, %cst [1] : vector<16x32xf32> to vector<16xf32>
    %2 = vector.shape_cast %1 : vector<16xf32> to vector<16x1xf32>
    %cst_1 = arith.constant 3.200000e+01 : f32
    %3 = vector.broadcast %cst_1 : f32 to vector<16x1xf32>
    %4 = arith.divf %2, %3 : vector<16x1xf32>
    %5 = vector.broadcast %4 : vector<16x1xf32> to vector<16x32xf32>
    %6 = arith.subf %0, %5 : vector<16x32xf32>
    %7 = vector.broadcast %4 : vector<16x1xf32> to vector<16x32xf32>
    %8 = arith.subf %0, %7 : vector<16x32xf32>
    %9 = arith.mulf %6, %8 : vector<16x32xf32>
    %cst_2 = arith.constant dense<0.000000e+00> : vector<16xf32>
    %10 = vector.multi_reduction <add>, %9, %cst_2 [1] : vector<16x32xf32> to vector<16xf32>
    %11 = vector.shape_cast %10 : vector<16xf32> to vector<16x1xf32>
    %cst_3 = arith.constant 3.200000e+01 : f32
    %12 = vector.broadcast %cst_3 : f32 to vector<16x1xf32>
    %13 = arith.divf %11, %12 : vector<16x1xf32>
    %cst_4 = arith.constant 9.99999996E-13 : f32
    %14 = vector.broadcast %cst_4 : f32 to vector<16x1xf32>
    %15 = arith.addf %13, %14 : vector<16x1xf32>
    %16 = math.rsqrt %15 : vector<16x1xf32>
    %17 = vector.broadcast %4 : vector<16x1xf32> to vector<16x32xf32>
    %18 = arith.subf %0, %17 : vector<16x32xf32>
    %19 = vector.broadcast %16 : vector<16x1xf32> to vector<16x32xf32>
    %20 = arith.mulf %18, %19 : vector<16x32xf32>
    %c0_5 = arith.constant 0 : index
    %c0_6 = arith.constant 0 : index
    %21 = vector.load %arg2[%c0_5, %c0_6] : memref<1x32xf32, #tpu.memory_space<vmem>>, vector<1x32xf32>
    %22 = vector.broadcast %21 : vector<1x32xf32> to vector<16x32xf32>
    %23 = arith.mulf %20, %22 : vector<16x32xf32>
    %c0_7 = arith.constant 0 : index
    %c0_8 = arith.constant 0 : index
    %24 = vector.load %arg3[%c0_7, %c0_8] : memref<1x32xf32, #tpu.memory_space<vmem>>, vector<1x32xf32>
    %25 = vector.broadcast %24 : vector<1x32xf32> to vector<16x32xf32>
    %26 = arith.addf %23, %25 : vector<16x32xf32>
    %c0_9 = arith.constant 0 : index
    %c0_10 = arith.constant 0 : index
    %27 = vector.load %arg4[%c0_9, %c0_10] : memref<16x32xf32, #tpu.memory_space<vmem>>, vector<16x32xf32>
    tpu.vector_store %arg4[%c0_9, %c0_10], %26 {strides = array<i32>} : memref<16x32xf32, #tpu.memory_space<vmem>>, vector<16x32xf32>,
    return
  }
  func.func @transform_0(%arg0: i32) -> (i32, i32) {
    %c0_i32 = arith.constant 0 : i32
    %c0_i32_0 = arith.constant 0 : i32
    %c0_i32_1 = arith.constant 0 : i32
    return %c0_i32, %c0_i32_0 : i32, i32
  }
  func.func @transform_1(%arg0: i32) -> (i32, i32) {
    %c0_i32 = arith.constant 0 : i32
    %c0_i32_0 = arith.constant 0 : i32
    %c0_i32_1 = arith.constant 0 : i32
    return %c0_i32, %c0_i32_0 : i32, i32
  }
  func.func @transform_2(%arg0: i32) -> (i32, i32) {
    %c0_i32 = arith.constant 0 : i32
    %c0_i32_0 = arith.constant 0 : i32
    %c0_i32_1 = arith.constant 0 : i32
    return %c0_i32, %c0_i32_0 : i32, i32
  }
  func.func @transform_3(%arg0: i32) -> (i32, i32) {
    %c0_i32 = arith.constant 0 : i32
    %c0_i32_0 = arith.constant 0 : i32
    %c0_i32_1 = arith.constant 0 : i32
    return %c0_i32, %c0_i32_0 : i32, i32
  }
}

module attributes {stable_mosaic.version = 11 : i64} {
  func.func @_ffn_block_kernel(%arg0: i32, %arg1: memref<16x32xf32, #tpu.memory_space<vmem>>, %arg2: memref<32x64xbf16, #tpu.memory_space<vmem>>, %arg3: memref<1x64xf32, #tpu.memory_space<vmem>>, %arg4: memref<64x32xbf16, #tpu.memory_space<vmem>>, %arg5: memref<1x32xf32, #tpu.memory_space<vmem>>, %arg6: memref<1x32xf32, #tpu.memory_space<vmem>>, %arg7: memref<1x32xf32, #tpu.memory_space<vmem>>, %arg8: memref<16x32xf32, #tpu.memory_space<vmem>>) attributes {dimension_semantics = [#tpu.dimension_semantics<arbitrary>], iteration_bounds = array<i64: 1>, scalar_prefetch = 0 : i64, scratch_operands = 0 : i64, tpu.core_type = #tpu.core_type<tc>, window_params = [{pipeline_mode = #tpu.pipeline_mode<synchronous>, transform_indices = @transform_0, window_bounds = array<i64: 16, 32>}, {pipeline_mode = #tpu.pipeline_mode<synchronous>, transform_indices = @transform_1, window_bounds = array<i64: 32, 64>}, {pipeline_mode = #tpu.pipeline_mode<synchronous>, transform_indices = @transform_2, window_bounds = array<i64: 1, 64>}, {pipeline_mode = #tpu.pipeline_mode<synchronous>, transform_indices = @transform_3, window_bounds = array<i64: 64, 32>}, {pipeline_mode = #tpu.pipeline_mode<synchronous>, transform_indices = @transform_4, window_bounds = array<i64: 1, 32>}, {pipeline_mode = #tpu.pipeline_mode<synchronous>, transform_indices = @transform_5, window_bounds = array<i64: 1, 32>}, {pipeline_mode = #tpu.pipeline_mode<synchronous>, transform_indices = @transform_6, window_bounds = array<i64: 1, 32>}, {pipeline_mode = #tpu.pipeline_mode<synchronous>, transform_indices = @transform_7, window_bounds = array<i64: 16, 32>}]} {
    %c0 = arith.constant 0 : index
    %c0_0 = arith.constant 0 : index
    %0 = vector.load %arg1[%c0, %c0_0] : memref<16x32xf32, #tpu.memory_space<vmem>>, vector<16x32xf32>
    %1 = arith.truncf %0 : vector<16x32xf32> to vector<16x32xbf16>
    %c0_1 = arith.constant 0 : index
    %c0_2 = arith.constant 0 : index
    %2 = vector.load %arg2[%c0_1, %c0_2] : memref<32x64xbf16, #tpu.memory_space<vmem>>, vector<32x64xbf16>
    %cst = arith.constant dense<0.000000e+00> : vector<16x64xf32>
    %3 = tpu.matmul %1, %2, %cst {dimension_numbers = #tpu.dot_dimension_numbers<[1], [0], [0], [1], [0, 0, 1, 1], [], []>} : vector<16x32xbf16>, vector<32x64xbf16>, vector<16x64xf32> -> vector<16x64xf32>
    %c0_3 = arith.constant 0 : index
    %c0_4 = arith.constant 0 : index
    %4 = vector.load %arg3[%c0_3, %c0_4] : memref<1x64xf32, #tpu.memory_space<vmem>>, vector<1x64xf32>
    %5 = vector.broadcast %4 : vector<1x64xf32> to vector<16x64xf32>
    %6 = arith.addf %3, %5 : vector<16x64xf32>
    %cst_5 = arith.constant 5.000000e-01 : f32
    %7 = vector.broadcast %cst_5 : f32 to vector<16x64xf32>
    %8 = arith.mulf %7, %6 : vector<16x64xf32>
    %cst_6 = arith.constant 0.707106769 : f32
    %9 = vector.broadcast %cst_6 : f32 to vector<16x64xf32>
    %10 = arith.mulf %6, %9 : vector<16x64xf32>
    %11 = math.erf %10 : vector<16x64xf32>
    %cst_7 = arith.constant 1.000000e+00 : f32
    %12 = vector.broadcast %cst_7 : f32 to vector<16x64xf32>
    %13 = arith.addf %12, %11 : vector<16x64xf32>
    %14 = arith.mulf %8, %13 : vector<16x64xf32>
    %15 = arith.truncf %14 : vector<16x64xf32> to vector<16x64xbf16>
    %c0_8 = arith.constant 0 : index
    %c0_9 = arith.constant 0 : index
    %16 = vector.load %arg4[%c0_8, %c0_9] : memref<64x32xbf16, #tpu.memory_space<vmem>>, vector<64x32xbf16>
    %cst_10 = arith.constant dense<0.000000e+00> : vector<16x32xf32>
    %17 = tpu.matmul %15, %16, %cst_10 {dimension_numbers = #tpu.dot_dimension_numbers<[1], [0], [0], [1], [0, 0, 1, 1], [], []>} : vector<16x64xbf16>, vector<64x32xbf16>, vector<16x32xf32> -> vector<16x32xf32>
    %c0_11 = arith.constant 0 : index
    %c0_12 = arith.constant 0 : index
    %18 = vector.load %arg5[%c0_11, %c0_12] : memref<1x32xf32, #tpu.memory_space<vmem>>, vector<1x32xf32>
    %19 = vector.broadcast %18 : vector<1x32xf32> to vector<16x32xf32>
    %20 = arith.addf %17, %19 : vector<16x32xf32>
    %21 = arith.addf %20, %0 : vector<16x32xf32>
    %cst_13 = arith.constant dense<0.000000e+00> : vector<16xf32>
    %22 = vector.multi_reduction <add>, %21, %cst_13 [1] : vector<16x32xf32> to vector<16xf32>
    %23 = vector.shape_cast %22 : vector<16xf32> to vector<16x1xf32>
    %cst_14 = arith.constant 3.200000e+01 : f32
    %24 = vector.broadcast %cst_14 : f32 to vector<16x1xf32>
    %25 = arith.divf %23, %24 : vector<16x1xf32>
    %26 = vector.broadcast %25 : vector<16x1xf32> to vector<16x32xf32>
    %27 = arith.subf %21, %26 : vector<16x32xf32>
    %28 = vector.broadcast %25 : vector<16x1xf32> to vector<16x32xf32>
    %29 = arith.subf %21, %28 : vector<16x32xf32>
    %30 = arith.mulf %27, %29 : vector<16x32xf32>
    %cst_15 = arith.constant dense<0.000000e+00> : vector<16xf32>
    %31 = vector.multi_reduction <add>, %30, %cst_15 [1] : vector<16x32xf32> to vector<16xf32>
    %32 = vector.shape_cast %31 : vector<16xf32> to vector<16x1xf32>
    %cst_16 = arith.constant 3.200000e+01 : f32
    %33 = vector.broadcast %cst_16 : f32 to vector<16x1xf32>
    %34 = arith.divf %32, %33 : vector<16x1xf32>
    %cst_17 = arith.constant 9.99999996E-13 : f32
    %35 = vector.broadcast %cst_17 : f32 to vector<16x1xf32>
    %36 = arith.addf %34, %35 : vector<16x1xf32>
    %37 = math.rsqrt %36 : vector<16x1xf32>
    %38 = vector.broadcast %25 : vector<16x1xf32> to vector<16x32xf32>
    %39 = arith.subf %21, %38 : vector<16x32xf32>
    %40 = vector.broadcast %37 : vector<16x1xf32> to vector<16x32xf32>
    %41 = arith.mulf %39, %40 : vector<16x32xf32>
    %c0_18 = arith.constant 0 : index
    %c0_19 = arith.constant 0 : index
    %42 = vector.load %arg6[%c0_18, %c0_19] : memref<1x32xf32, #tpu.memory_space<vmem>>, vector<1x32xf32>
    %43 = vector.broadcast %42 : vector<1x32xf32> to vector<16x32xf32>
    %44 = arith.mulf %41, %43 : vector<16x32xf32>
    %c0_20 = arith.constant 0 : index
    %c0_21 = arith.constant 0 : index
    %45 = vector.load %arg7[%c0_20, %c0_21] : memref<1x32xf32, #tpu.memory_space<vmem>>, vector<1x32xf32>
    %46 = vector.broadcast %45 : vector<1x32xf32> to vector<16x32xf32>
    %47 = arith.addf %44, %46 : vector<16x32xf32>
    %c0_22 = arith.constant 0 : index
    %c0_23 = arith.constant 0 : index
    %48 = vector.load %arg8[%c0_22, %c0_23] : memref<16x32xf32, #tpu.memory_space<vmem>>, vector<16x32xf32>
    tpu.vector_store %arg8[%c0_22, %c0_23], %47 {strides = array<i32>} : memref<16x32xf32, #tpu.memory_space<vmem>>, vector<16x32xf32>,
    return
  }
  func.func @transform_0(%arg0: i32) -> (i32, i32) {
    %c0_i32 = arith.constant 0 : i32
    %c0_i32_0 = arith.constant 0 : i32
    %c0_i32_1 = arith.constant 0 : i32
    return %c0_i32, %c0_i32_0 : i32, i32
  }
  func.func @transform_1(%arg0: i32) -> (i32, i32) {
    %c0_i32 = arith.constant 0 : i32
    %c0_i32_0 = arith.constant 0 : i32
    %c0_i32_1 = arith.constant 0 : i32
    return %c0_i32, %c0_i32_0 : i32, i32
  }
  func.func @transform_2(%arg0: i32) -> (i32, i32) {
    %c0_i32 = arith.constant 0 : i32
    %c0_i32_0 = arith.constant 0 : i32
    %c0_i32_1 = arith.constant 0 : i32
    return %c0_i32, %c0_i32_0 : i32, i32
  }
  func.func @transform_3(%arg0: i32) -> (i32, i32) {
    %c0_i32 = arith.constant 0 : i32
    %c0_i32_0 = arith.constant 0 : i32
    %c0_i32_1 = arith.constant 0 : i32
    return %c0_i32, %c0_i32_0 : i32, i32
  }
  func.func @transform_4(%arg0: i32) -> (i32, i32) {
    %c0_i32 = arith.constant 0 : i32
    %c0_i32_0 = arith.constant 0 : i32
    %c0_i32_1 = arith.constant 0 : i32
    return %c0_i32, %c0_i32_0 : i32, i32
  }
  func.func @transform_5(%arg0: i32) -> (i32, i32) {
    %c0_i32 = arith.constant 0 : i32
    %c0_i32_0 = arith.constant 0 : i32
    %c0_i32_1 = arith.constant 0 : i32
    return %c0_i32, %c0_i32_0 : i32, i32
  }
  func.func @transform_6(%arg0: i32) -> (i32, i32) {
    %c0_i32 = arith.constant 0 : i32
    %c0_i32_0 = arith.constant 0 : i32
    %c0_i32_1 = arith.constant 0 : i32
    return %c0_i32, %c0_i32_0 : i32, i32
  }
  func.func @transform_7(%arg0: i32) -> (i32, i32) {
    %c0_i32 = arith.constant 0 : i32
    %c0_i32_0 = arith.constant 0 : i32
    %c0_i32_1 = arith.constant 0 : i32
    return %c0_i32, %c0_i32_0 : i32, i32
  }
}

module attributes {stable_mosaic.version = 11 : i64} {
  func.func @_pool_cls_kernel(%arg0: i32, %arg1: memref<16x32xf32, #tpu.memory_space<vmem>>, %arg2: memref<32x32xbf16, #tpu.memory_space<vmem>>, %arg3: memref<1x32xf32, #tpu.memory_space<vmem>>, %arg4: memref<32x128xbf16, #tpu.memory_space<vmem>>, %arg5: memref<1x128xf32, #tpu.memory_space<vmem>>, %arg6: memref<2x128xf32, #tpu.memory_space<vmem>>) attributes {dimension_semantics = [#tpu.dimension_semantics<arbitrary>], iteration_bounds = array<i64: 1>, scalar_prefetch = 0 : i64, scratch_operands = 0 : i64, tpu.core_type = #tpu.core_type<tc>, window_params = [{pipeline_mode = #tpu.pipeline_mode<synchronous>, transform_indices = @transform_0, window_bounds = array<i64: 16, 32>}, {pipeline_mode = #tpu.pipeline_mode<synchronous>, transform_indices = @transform_1, window_bounds = array<i64: 32, 32>}, {pipeline_mode = #tpu.pipeline_mode<synchronous>, transform_indices = @transform_2, window_bounds = array<i64: 1, 32>}, {pipeline_mode = #tpu.pipeline_mode<synchronous>, transform_indices = @transform_3, window_bounds = array<i64: 32, 128>}, {pipeline_mode = #tpu.pipeline_mode<synchronous>, transform_indices = @transform_4, window_bounds = array<i64: 1, 128>}, {pipeline_mode = #tpu.pipeline_mode<synchronous>, transform_indices = @transform_5, window_bounds = array<i64: 2, 128>}]} {
    %c0 = arith.constant 0 : index
    %c0_0 = arith.constant 0 : index
    %0 = vector.load %arg1[%c0, %c0_0] : memref<16x32xf32, #tpu.memory_space<vmem>>, vector<16x32xf32>
    %1 = vector.extract_strided_slice %0 {offsets = [0, 0], sizes = [1, 32], strides = [1, 1]} : vector<16x32xf32> to vector<1x32xf32>
    %2 = vector.extract_strided_slice %0 {offsets = [8, 0], sizes = [1, 32], strides = [1, 1]} : vector<16x32xf32> to vector<1x32xf32>
    %3 = tpu.concatenate %1, %2 in 0 : vector<1x32xf32>, vector<1x32xf32> -> vector<2x32xf32>
    %4 = arith.truncf %3 : vector<2x32xf32> to vector<2x32xbf16>
    %c0_1 = arith.constant 0 : index
    %c0_2 = arith.constant 0 : index
    %5 = vector.load %arg2[%c0_1, %c0_2] : memref<32x32xbf16, #tpu.memory_space<vmem>>, vector<32x32xbf16>
    %cst = arith.constant dense<0.000000e+00> : vector<2x32xf32>
    %6 = tpu.matmul %4, %5, %cst {dimension_numbers = #tpu.dot_dimension_numbers<[1], [0], [0], [1], [0, 0, 1, 1], [], []>} : vector<2x32xbf16>, vector<32x32xbf16>, vector<2x32xf32> -> vector<2x32xf32>
    %c0_3 = arith.constant 0 : index
    %c0_4 = arith.constant 0 : index
    %7 = vector.load %arg3[%c0_3, %c0_4] : memref<1x32xf32, #tpu.memory_space<vmem>>, vector<1x32xf32>
    %8 = vector.broadcast %7 : vector<1x32xf32> to vector<2x32xf32>
    %9 = arith.addf %6, %8 : vector<2x32xf32>
    %10 = math.tanh %9 : vector<2x32xf32>
    %11 = arith.truncf %10 : vector<2x32xf32> to vector<2x32xbf16>
    %c0_5 = arith.constant 0 : index
    %c0_6 = arith.constant 0 : index
    %12 = vector.load %arg4[%c0_5, %c0_6] : memref<32x128xbf16, #tpu.memory_space<vmem>>, vector<32x128xbf16>
    %cst_7 = arith.constant dense<0.000000e+00> : vector<2x128xf32>
    %13 = tpu.matmul %11, %12, %cst_7 {dimension_numbers = #tpu.dot_dimension_numbers<[1], [0], [0], [1], [0, 0, 1, 1], [], []>} : vector<2x32xbf16>, vector<32x128xbf16>, vector<2x128xf32> -> vector<2x128xf32>
    %c0_8 = arith.constant 0 : index
    %c0_9 = arith.constant 0 : index
    %14 = vector.load %arg5[%c0_8, %c0_9] : memref<1x128xf32, #tpu.memory_space<vmem>>, vector<1x128xf32>
    %15 = vector.broadcast %14 : vector<1x128xf32> to vector<2x128xf32>
    %16 = arith.addf %13, %15 : vector<2x128xf32>
    %c0_10 = arith.constant 0 : index
    %c0_11 = arith.constant 0 : index
    %17 = vector.load %arg6[%c0_10, %c0_11] : memref<2x128xf32, #tpu.memory_space<vmem>>, vector<2x128xf32>
    tpu.vector_store %arg6[%c0_10, %c0_11], %16 {strides = array<i32>} : memref<2x128xf32, #tpu.memory_space<vmem>>, vector<2x128xf32>,
    return
  }
  func.func @transform_0(%arg0: i32) -> (i32, i32) {
    %c0_i32 = arith.constant 0 : i32
    %c0_i32_0 = arith.constant 0 : i32
    %c0_i32_1 = arith.constant 0 : i32
    return %c0_i32, %c0_i32_0 : i32, i32
  }
  func.func @transform_1(%arg0: i32) -> (i32, i32) {
    %c0_i32 = arith.constant 0 : i32
    %c0_i32_0 = arith.constant 0 : i32
    %c0_i32_1 = arith.constant 0 : i32
    return %c0_i32, %c0_i32_0 : i32, i32
  }
  func.func @transform_2(%arg0: i32) -> (i32, i32) {
    %c0_i32 = arith.constant 0 : i32
    %c0_i32_0 = arith.constant 0 : i32
    %c0_i32_1 = arith.constant 0 : i32
    return %c0_i32, %c0_i32_0 : i32, i32
  }
  func.func @transform_3(%arg0: i32) -> (i32, i32) {
    %c0_i32 = arith.constant 0 : i32
    %c0_i32_0 = arith.constant 0 : i32
    %c0_i32_1 = arith.constant 0 : i32
    return %c0_i32, %c0_i32_0 : i32, i32
  }
  func.func @transform_4(%arg0: i32) -> (i32, i32) {
    %c0_i32 = arith.constant 0 : i32
    %c0_i32_0 = arith.constant 0 : i32
    %c0_i32_1 = arith.constant 0 : i32
    return %c0_i32, %c0_i32_0 : i32, i32
  }
  func.func @transform_5(%arg0: i32) -> (i32, i32) {
    %c0_i32 = arith.constant 0 : i32
    %c0_i32_0 = arith.constant 0 : i32
    %c0_i32_1 = arith.constant 0 : i32
    return %c0_i32, %c0_i32_0 : i32, i32
  }
}

module attributes {stable_mosaic.version = 11 : i64} {
  func.func @_attn_block_kernel(%arg0: i32, %arg1: memref<16x32xf32, #tpu.memory_space<vmem>>, %arg2: memref<32x96xbf16, #tpu.memory_space<vmem>>, %arg3: memref<1x96xf32, #tpu.memory_space<vmem>>, %arg4: memref<32x32xbf16, #tpu.memory_space<vmem>>, %arg5: memref<1x32xf32, #tpu.memory_space<vmem>>, %arg6: memref<2x1x8xf32, #tpu.memory_space<vmem>>, %arg7: memref<1x32xf32, #tpu.memory_space<vmem>>, %arg8: memref<1x32xf32, #tpu.memory_space<vmem>>, %arg9: memref<16x32xf32, #tpu.memory_space<vmem>>) attributes {dimension_semantics = [#tpu.dimension_semantics<arbitrary>], iteration_bounds = array<i64: 1>, scalar_prefetch = 0 : i64, scratch_operands = 0 : i64, tpu.core_type = #tpu.core_type<tc>, window_params = [{pipeline_mode = #tpu.pipeline_mode<synchronous>, transform_indices = @transform_0, window_bounds = array<i64: 16, 32>}, {pipeline_mode = #tpu.pipeline_mode<synchronous>, transform_indices = @transform_1, window_bounds = array<i64: 32, 96>}, {pipeline_mode = #tpu.pipeline_mode<synchronous>, transform_indices = @transform_2, window_bounds = array<i64: 1, 96>}, {pipeline_mode = #tpu.pipeline_mode<synchronous>, transform_indices = @transform_3, window_bounds = array<i64: 32, 32>}, {pipeline_mode = #tpu.pipeline_mode<synchronous>, transform_indices = @transform_4, window_bounds = array<i64: 1, 32>}, {pipeline_mode = #tpu.pipeline_mode<synchronous>, transform_indices = @transform_5, window_bounds = array<i64: 2, 1, 8>}, {pipeline_mode = #tpu.pipeline_mode<synchronous>, transform_indices = @transform_6, window_bounds = array<i64: 1, 32>}, {pipeline_mode = #tpu.pipeline_mode<synchronous>, transform_indices = @transform_7, window_bounds = array<i64: 1, 32>}, {pipeline_mode = #tpu.pipeline_mode<synchronous>, transform_indices = @transform_8, window_bounds = array<i64: 16, 32>}]} {
    %c0 = arith.constant 0 : index
    %c0_0 = arith.constant 0 : index
    %0 = vector.load %arg1[%c0, %c0_0] : memref<16x32xf32, #tpu.memory_space<vmem>>, vector<16x32xf32>
    %1 = arith.truncf %0 : vector<16x32xf32> to vector<16x32xbf16>
    %c0_1 = arith.constant 0 : index
    %c0_2 = arith.constant 0 : index
    %2 = vector.load %arg2[%c0_1, %c0_2] : memref<32x96xbf16, #tpu.memory_space<vmem>>, vector<32x96xbf16>
    %cst = arith.constant dense<0.000000e+00> : vector<16x96xf32>
    %3 = tpu.matmul %1, %2, %cst {dimension_numbers = #tpu.dot_dimension_numbers<[1], [0], [0], [1], [0, 0, 1, 1], [], []>} : vector<16x32xbf16>, vector<32x96xbf16>, vector<16x96xf32> -> vector<16x96xf32>
    %c0_3 = arith.constant 0 : index
    %c0_4 = arith.constant 0 : index
    %4 = vector.load %arg3[%c0_3, %c0_4] : memref<1x96xf32, #tpu.memory_space<vmem>>, vector<1x96xf32>
    %5 = vector.broadcast %4 : vector<1x96xf32> to vector<16x96xf32>
    %6 = arith.addf %3, %5 : vector<16x96xf32>
    %7 = vector.extract_strided_slice %6 {offsets = [0, 0], sizes = [16, 32], strides = [1, 1]} : vector<16x96xf32> to vector<16x32xf32>
    %8 = vector.extract_strided_slice %6 {offsets = [0, 32], sizes = [16, 32], strides = [1, 1]} : vector<16x96xf32> to vector<16x32xf32>
    %9 = vector.extract_strided_slice %6 {offsets = [0, 64], sizes = [16, 32], strides = [1, 1]} : vector<16x96xf32> to vector<16x32xf32>
    %c0_5 = arith.constant 0 : index
    %c0_6 = arith.constant 0 : index
    %10 = vector.load %arg4[%c0_5, %c0_6] : memref<32x32xbf16, #tpu.memory_space<vmem>>, vector<32x32xbf16>
    %11 = vector.extract_strided_slice %7 {offsets = [0, 0], sizes = [8, 32], strides = [1, 1]} : vector<16x32xf32> to vector<8x32xf32>
    %12 = vector.extract_strided_slice %8 {offsets = [0, 0], sizes = [8, 32], strides = [1, 1]} : vector<16x32xf32> to vector<8x32xf32>
    %13 = vector.extract_strided_slice %9 {offsets = [0, 0], sizes = [8, 32], strides = [1, 1]} : vector<16x32xf32> to vector<8x32xf32>
    %c0_7 = arith.constant 0 : index
    %c0_8 = arith.constant 0 : index
    %c0_9 = arith.constant 0 : index
    %14 = vector.load %arg6[%c0_7, %c0_8, %c0_9] : memref<2x1x8xf32, #tpu.memory_space<vmem>>, vector<1x1x8xf32>
    %15 = vector.shape_cast %14 : vector<1x1x8xf32> to vector<1x8xf32>
    %cst_10 = arith.constant 0.000000e+00 : f32
    %16 = vector.broadcast %cst_10 : f32 to vector<8x32xf32>
    %17 = vector.extract_strided_slice %11 {offsets = [0, 0], sizes = [8, 16], strides = [1, 1]} : vector<8x32xf32> to vector<8x16xf32>
    %18 = vector.extract_strided_slice %12 {offsets = [0, 0], sizes = [8, 16], strides = [1, 1]} : vector<8x32xf32> to vector<8x16xf32>
    %19 = vector.extract_strided_slice %13 {offsets = [0, 0], sizes = [8, 16], strides = [1, 1]} : vector<8x32xf32> to vector<8x16xf32>
    %cst_11 = arith.constant dense<0.000000e+00> : vector<8x8xf32>
    %20 = tpu.matmul %17, %18, %cst_11 {dimension_numbers = #tpu.dot_dimension_numbers<[1], [1], [0], [0], [0, 0, 1, 0], [], []>} : vector<8x16xf32>, vector<8x16xf32>, vector<8x8xf32> -> vector<8x8xf32>
    %cst_12 = arith.constant 2.500000e-01 : f32
    %21 = vector.broadcast %cst_12 : f32 to vector<8x8xf32>
    %22 = arith.mulf %20, %21 : vector<8x8xf32>
    %23 = vector.broadcast %15 : vector<1x8xf32> to vector<8x8xf32>
    %24 = arith.addf %22, %23 : vector<8x8xf32>
    %cst_13 = arith.constant dense<0xFF800000> : vector<8xf32>
    %25 = vector.multi_reduction <maximumf>, %24, %cst_13 [1] : vector<8x8xf32> to vector<8xf32>
    %26 = vector.shape_cast %25 : vector<8xf32> to vector<8x1xf32>
    %27 = vector.broadcast %26 : vector<8x1xf32> to vector<8x8xf32>
    %28 = arith.subf %24, %27 : vector<8x8xf32>
    %29 = math.exp %28 : vector<8x8xf32>
    %cst_14 = arith.constant dense<0.000000e+00> : vector<8xf32>
    %30 = vector.multi_reduction <add>, %29, %cst_14 [1] : vector<8x8xf32> to vector<8xf32>
    %31 = vector.shape_cast %30 : vector<8xf32> to vector<8x1xf32>
    %32 = tpu.reciprocal %31 {approx = true} : vector<8x1xf32> -> vector<8x1xf32>
    %33 = vector.broadcast %32 : vector<8x1xf32> to vector<8x8xf32>
    %34 = arith.mulf %29, %33 : vector<8x8xf32>
    %35 = arith.truncf %34 : vector<8x8xf32> to vector<8x8xbf16>
    %36 = arith.truncf %19 : vector<8x16xf32> to vector<8x16xbf16>
    %cst_15 = arith.constant dense<0.000000e+00> : vector<8x16xf32>
    %37 = tpu.matmul %35, %36, %cst_15 {dimension_numbers = #tpu.dot_dimension_numbers<[1], [0], [0], [1], [0, 0, 1, 1], [], []>} : vector<8x8xbf16>, vector<8x16xbf16>, vector<8x16xf32> -> vector<8x16xf32>
    %38 = arith.truncf %37 : vector<8x16xf32> to vector<8x16xbf16>
    %39 = vector.extract_strided_slice %10 {offsets = [0, 0], sizes = [16, 32], strides = [1, 1]} : vector<32x32xbf16> to vector<16x32xbf16>
    %cst_16 = arith.constant dense<0.000000e+00> : vector<8x32xf32>
    %40 = tpu.matmul %38, %39, %cst_16 {dimension_numbers = #tpu.dot_dimension_numbers<[1], [0], [0], [1], [0, 0, 1, 1], [], []>} : vector<8x16xbf16>, vector<16x32xbf16>, vector<8x32xf32> -> vector<8x32xf32>
    %41 = arith.addf %16, %40 : vector<8x32xf32>
    %42 = vector.extract_strided_slice %11 {offsets = [0, 16], sizes = [8, 16], strides = [1, 1]} : vector<8x32xf32> to vector<8x16xf32>
    %43 = vector.extract_strided_slice %12 {offsets = [0, 16], sizes = [8, 16], strides = [1, 1]} : vector<8x32xf32> to vector<8x16xf32>
    %44 = vector.extract_strided_slice %13 {offsets = [0, 16], sizes = [8, 16], strides = [1, 1]} : vector<8x32xf32> to vector<8x16xf32>
    %cst_17 = arith.constant dense<0.000000e+00> : vector<8x8xf32>
    %45 = tpu.matmul %42, %43, %cst_17 {dimension_numbers = #tpu.dot_dimension_numbers<[1], [1], [0], [0], [0, 0, 1, 0], [], []>} : vector<8x16xf32>, vector<8x16xf32>, vector<8x8xf32> -> vector<8x8xf32>
    %cst_18 = arith.constant 2.500000e-01 : f32
    %46 = vector.broadcast %cst_18 : f32 to vector<8x8xf32>
    %47 = arith.mulf %45, %46 : vector<8x8xf32>
    %48 = vector.broadcast %15 : vector<1x8xf32> to vector<8x8xf32>
    %49 = arith.addf %47, %48 : vector<8x8xf32>
    %cst_19 = arith.constant dense<0xFF800000> : vector<8xf32>
    %50 = vector.multi_reduction <maximumf>, %49, %cst_19 [1] : vector<8x8xf32> to vector<8xf32>
    %51 = vector.shape_cast %50 : vector<8xf32> to vector<8x1xf32>
    %52 = vector.broadcast %51 : vector<8x1xf32> to vector<8x8xf32>
    %53 = arith.subf %49, %52 : vector<8x8xf32>
    %54 = math.exp %53 : vector<8x8xf32>
    %cst_20 = arith.constant dense<0.000000e+00> : vector<8xf32>
    %55 = vector.multi_reduction <add>, %54, %cst_20 [1] : vector<8x8xf32> to vector<8xf32>
    %56 = vector.shape_cast %55 : vector<8xf32> to vector<8x1xf32>
    %57 = tpu.reciprocal %56 {approx = true} : vector<8x1xf32> -> vector<8x1xf32>
    %58 = vector.broadcast %57 : vector<8x1xf32> to vector<8x8xf32>
    %59 = arith.mulf %54, %58 : vector<8x8xf32>
    %60 = arith.truncf %59 : vector<8x8xf32> to vector<8x8xbf16>
    %61 = arith.truncf %44 : vector<8x16xf32> to vector<8x16xbf16>
    %cst_21 = arith.constant dense<0.000000e+00> : vector<8x16xf32>
    %62 = tpu.matmul %60, %61, %cst_21 {dimension_numbers = #tpu.dot_dimension_numbers<[1], [0], [0], [1], [0, 0, 1, 1], [], []>} : vector<8x8xbf16>, vector<8x16xbf16>, vector<8x16xf32> -> vector<8x16xf32>
    %63 = arith.truncf %62 : vector<8x16xf32> to vector<8x16xbf16>
    %64 = vector.extract_strided_slice %10 {offsets = [16, 0], sizes = [16, 32], strides = [1, 1]} : vector<32x32xbf16> to vector<16x32xbf16>
    %cst_22 = arith.constant dense<0.000000e+00> : vector<8x32xf32>
    %65 = tpu.matmul %63, %64, %cst_22 {dimension_numbers = #tpu.dot_dimension_numbers<[1], [0], [0], [1], [0, 0, 1, 1], [], []>} : vector<8x16xbf16>, vector<16x32xbf16>, vector<8x32xf32> -> vector<8x32xf32>
    %66 = arith.addf %41, %65 : vector<8x32xf32>
    %67 = vector.extract_strided_slice %7 {offsets = [8, 0], sizes = [8, 32], strides = [1, 1]} : vector<16x32xf32> to vector<8x32xf32>
    %68 = vector.extract_strided_slice %8 {offsets = [8, 0], sizes = [8, 32], strides = [1, 1]} : vector<16x32xf32> to vector<8x32xf32>
    %69 = vector.extract_strided_slice %9 {offsets = [8, 0], sizes = [8, 32], strides = [1, 1]} : vector<16x32xf32> to vector<8x32xf32>
    %c1 = arith.constant 1 : index
    %c0_23 = arith.constant 0 : index
    %c0_24 = arith.constant 0 : index
    %70 = vector.load %arg6[%c1, %c0_23, %c0_24] : memref<2x1x8xf32, #tpu.memory_space<vmem>>, vector<1x1x8xf32>
    %71 = vector.shape_cast %70 : vector<1x1x8xf32> to vector<1x8xf32>
    %cst_25 = arith.constant 0.000000e+00 : f32
    %72 = vector.broadcast %cst_25 : f32 to vector<8x32xf32>
    %73 = vector.extract_strided_slice %67 {offsets = [0, 0], sizes = [8, 16], strides = [1, 1]} : vector<8x32xf32> to vector<8x16xf32>
    %74 = vector.extract_strided_slice %68 {offsets = [0, 0], sizes = [8, 16], strides = [1, 1]} : vector<8x32xf32> to vector<8x16xf32>
    %75 = vector.extract_strided_slice %69 {offsets = [0, 0], sizes = [8, 16], strides = [1, 1]} : vector<8x32xf32> to vector<8x16xf32>
    %cst_26 = arith.constant dense<0.000000e+00> : vector<8x8xf32>
    %76 = tpu.matmul %73, %74, %cst_26 {dimension_numbers = #tpu.dot_dimension_numbers<[1], [1], [0], [0], [0, 0, 1, 0], [], []>} : vector<8x16xf32>, vector<8x16xf32>, vector<8x8xf32> -> vector<8x8xf32>
    %cst_27 = arith.constant 2.500000e-01 : f32
    %77 = vector.broadcast %cst_27 : f32 to vector<8x8xf32>
    %78 = arith.mulf %76, %77 : vector<8x8xf32>
    %79 = vector.broadcast %71 : vector<1x8xf32> to vector<8x8xf32>
    %80 = arith.addf %78, %79 : vector<8x8xf32>
    %cst_28 = arith.constant dense<0xFF800000> : vector<8xf32>
    %81 = vector.multi_reduction <maximumf>, %80, %cst_28 [1] : vector<8x8xf32> to vector<8xf32>
    %82 = vector.shape_cast %81 : vector<8xf32> to vector<8x1xf32>
    %83 = vector.broadcast %82 : vector<8x1xf32> to vector<8x8xf32>
    %84 = arith.subf %80, %83 : vector<8x8xf32>
    %85 = math.exp %84 : vector<8x8xf32>
    %cst_29 = arith.constant dense<0.000000e+00> : vector<8xf32>
    %86 = vector.multi_reduction <add>, %85, %cst_29 [1] : vector<8x8xf32> to vector<8xf32>
    %87 = vector.shape_cast %86 : vector<8xf32> to vector<8x1xf32>
    %88 = tpu.reciprocal %87 {approx = true} : vector<8x1xf32> -> vector<8x1xf32>
    %89 = vector.broadcast %88 : vector<8x1xf32> to vector<8x8xf32>
    %90 = arith.mulf %85, %89 : vector<8x8xf32>
    %91 = arith.truncf %90 : vector<8x8xf32> to vector<8x8xbf16>
    %92 = arith.truncf %75 : vector<8x16xf32> to vector<8x16xbf16>
    %cst_30 = arith.constant dense<0.000000e+00> : vector<8x16xf32>
    %93 = tpu.matmul %91, %92, %cst_30 {dimension_numbers = #tpu.dot_dimension_numbers<[1], [0], [0], [1], [0, 0, 1, 1], [], []>} : vector<8x8xbf16>, vector<8x16xbf16>, vector<8x16xf32> -> vector<8x16xf32>
    %94 = arith.truncf %93 : vector<8x16xf32> to vector<8x16xbf16>
    %95 = vector.extract_strided_slice %10 {offsets = [0, 0], sizes = [16, 32], strides = [1, 1]} : vector<32x32xbf16> to vector<16x32xbf16>
    %cst_31 = arith.constant dense<0.000000e+00> : vector<8x32xf32>
    %96 = tpu.matmul %94, %95, %cst_31 {dimension_numbers = #tpu.dot_dimension_numbers<[1], [0], [0], [1], [0, 0, 1, 1], [], []>} : vector<8x16xbf16>, vector<16x32xbf16>, vector<8x32xf32> -> vector<8x32xf32>
    %97 = arith.addf %72, %96 : vector<8x32xf32>
    %98 = vector.extract_strided_slice %67 {offsets = [0, 16], sizes = [8, 16], strides = [1, 1]} : vector<8x32xf32> to vector<8x16xf32>
    %99 = vector.extract_strided_slice %68 {offsets = [0, 16], sizes = [8, 16], strides = [1, 1]} : vector<8x32xf32> to vector<8x16xf32>
    %100 = vector.extract_strided_slice %69 {offsets = [0, 16], sizes = [8, 16], strides = [1, 1]} : vector<8x32xf32> to vector<8x16xf32>
    %cst_32 = arith.constant dense<0.000000e+00> : vector<8x8xf32>
    %101 = tpu.matmul %98, %99, %cst_32 {dimension_numbers = #tpu.dot_dimension_numbers<[1], [1], [0], [0], [0, 0, 1, 0], [], []>} : vector<8x16xf32>, vector<8x16xf32>, vector<8x8xf32> -> vector<8x8xf32>
    %cst_33 = arith.constant 2.500000e-01 : f32
    %102 = vector.broadcast %cst_33 : f32 to vector<8x8xf32>
    %103 = arith.mulf %101, %102 : vector<8x8xf32>
    %104 = vector.broadcast %71 : vector<1x8xf32> to vector<8x8xf32>
    %105 = arith.addf %103, %104 : vector<8x8xf32>
    %cst_34 = arith.constant dense<0xFF800000> : vector<8xf32>
    %106 = vector.multi_reduction <maximumf>, %105, %cst_34 [1] : vector<8x8xf32> to vector<8xf32>
    %107 = vector.shape_cast %106 : vector<8xf32> to vector<8x1xf32>
    %108 = vector.broadcast %107 : vector<8x1xf32> to vector<8x8xf32>
    %109 = arith.subf %105, %108 : vector<8x8xf32>
    %110 = math.exp %109 : vector<8x8xf32>
    %cst_35 = arith.constant dense<0.000000e+00> : vector<8xf32>
    %111 = vector.multi_reduction <add>, %110, %cst_35 [1] : vector<8x8xf32> to vector<8xf32>
    %112 = vector.shape_cast %111 : vector<8xf32> to vector<8x1xf32>
    %113 = tpu.reciprocal %112 {approx = true} : vector<8x1xf32> -> vector<8x1xf32>
    %114 = vector.broadcast %113 : vector<8x1xf32> to vector<8x8xf32>
    %115 = arith.mulf %110, %114 : vector<8x8xf32>
    %116 = arith.truncf %115 : vector<8x8xf32> to vector<8x8xbf16>
    %117 = arith.truncf %100 : vector<8x16xf32> to vector<8x16xbf16>
    %cst_36 = arith.constant dense<0.000000e+00> : vector<8x16xf32>
    %118 = tpu.matmul %116, %117, %cst_36 {dimension_numbers = #tpu.dot_dimension_numbers<[1], [0], [0], [1], [0, 0, 1, 1], [], []>} : vector<8x8xbf16>, vector<8x16xbf16>, vector<8x16xf32> -> vector<8x16xf32>
    %119 = arith.truncf %118 : vector<8x16xf32> to vector<8x16xbf16>
    %120 = vector.extract_strided_slice %10 {offsets = [16, 0], sizes = [16, 32], strides = [1, 1]} : vector<32x32xbf16> to vector<16x32xbf16>
    %cst_37 = arith.constant dense<0.000000e+00> : vector<8x32xf32>
    %121 = tpu.matmul %119, %120, %cst_37 {dimension_numbers = #tpu.dot_dimension_numbers<[1], [0], [0], [1], [0, 0, 1, 1], [], []>} : vector<8x16xbf16>, vector<16x32xbf16>, vector<8x32xf32> -> vector<8x32xf32>
    %122 = arith.addf %97, %121 : vector<8x32xf32>
    %123 = tpu.concatenate %66, %122 in 0 : vector<8x32xf32>, vector<8x32xf32> -> vector<16x32xf32>
    %c0_38 = arith.constant 0 : index
    %c0_39 = arith.constant 0 : index
    %124 = vector.load %arg5[%c0_38, %c0_39] : memref<1x32xf32, #tpu.memory_space<vmem>>, vector<1x32xf32>
    %125 = vector.broadcast %124 : vector<1x32xf32> to vector<16x32xf32>
    %126 = arith.addf %123, %125 : vector<16x32xf32>
    %127 = arith.addf %126, %0 : vector<16x32xf32>
    %cst_40 = arith.constant dense<0.000000e+00> : vector<16xf32>
    %128 = vector.multi_reduction <add>, %127, %cst_40 [1] : vector<16x32xf32> to vector<16xf32>
    %129 = vector.shape_cast %128 : vector<16xf32> to vector<16x1xf32>
    %cst_41 = arith.constant 3.200000e+01 : f32
    %130 = vector.broadcast %cst_41 : f32 to vector<16x1xf32>
    %131 = arith.divf %129, %130 : vector<16x1xf32>
    %132 = vector.broadcast %131 : vector<16x1xf32> to vector<16x32xf32>
    %133 = arith.subf %127, %132 : vector<16x32xf32>
    %134 = vector.broadcast %131 : vector<16x1xf32> to vector<16x32xf32>
    %135 = arith.subf %127, %134 : vector<16x32xf32>
    %136 = arith.mulf %133, %135 : vector<16x32xf32>
    %cst_42 = arith.constant dense<0.000000e+00> : vector<16xf32>
    %137 = vector.multi_reduction <add>, %136, %cst_42 [1] : vector<16x32xf32> to vector<16xf32>
    %138 = vector.shape_cast %137 : vector<16xf32> to vector<16x1xf32>
    %cst_43 = arith.constant 3.200000e+01 : f32
    %139 = vector.broadcast %cst_43 : f32 to vector<16x1xf32>
    %140 = arith.divf %138, %139 : vector<16x1xf32>
    %cst_44 = arith.constant 9.99999996E-13 : f32
    %141 = vector.broadcast %cst_44 : f32 to vector<16x1xf32>
    %142 = arith.addf %140, %141 : vector<16x1xf32>
    %143 = math.rsqrt %142 : vector<16x1xf32>
    %144 = vector.broadcast %131 : vector<16x1xf32> to vector<16x32xf32>
    %145 = arith.subf %127, %144 : vector<16x32xf32>
    %146 = vector.broadcast %143 : vector<16x1xf32> to vector<16x32xf32>
    %147 = arith.mulf %145, %146 : vector<16x32xf32>
    %c0_45 = arith.constant 0 : index
    %c0_46 = arith.constant 0 : index
    %148 = vector.load %arg7[%c0_45, %c0_46] : memref<1x32xf32, #tpu.memory_space<vmem>>, vector<1x32xf32>
    %149 = vector.broadcast %148 : vector<1x32xf32> to vector<16x32xf32>
    %150 = arith.mulf %147, %149 : vector<16x32xf32>
    %c0_47 = arith.constant 0 : index
    %c0_48 = arith.constant 0 : index
    %151 = vector.load %arg8[%c0_47, %c0_48] : memref<1x32xf32, #tpu.memory_space<vmem>>, vector<1x32xf32>
    %152 = vector.broadcast %151 : vector<1x32xf32> to vector<16x32xf32>
    %153 = arith.addf %150, %152 : vector<16x32xf32>
    %c0_49 = arith.constant 0 : index
    %c0_50 = arith.constant 0 : index
    %154 = vector.load %arg9[%c0_49, %c0_50] : memref<16x32xf32, #tpu.memory_space<vmem>>, vector<16x32xf32>
    tpu.vector_store %arg9[%c0_49, %c0_50], %153 {strides = array<i32>} : memref<16x32xf32, #tpu.memory_space<vmem>>, vector<16x32xf32>,
    return
  }
  func.func @transform_0(%arg0: i32) -> (i32, i32) {
    %c0_i32 = arith.constant 0 : i32
    %c0_i32_0 = arith.constant 0 : i32
    %c0_i32_1 = arith.constant 0 : i32
    return %c0_i32, %c0_i32_0 : i32, i32
  }
  func.func @transform_1(%arg0: i32) -> (i32, i32) {
    %c0_i32 = arith.constant 0 : i32
    %c0_i32_0 = arith.constant 0 : i32
    %c0_i32_1 = arith.constant 0 : i32
    return %c0_i32, %c0_i32_0 : i32, i32
  }
  func.func @transform_2(%arg0: i32) -> (i32, i32) {
    %c0_i32 = arith.constant 0 : i32
    %c0_i32_0 = arith.constant 0 : i32
    %c0_i32_1 = arith.constant 0 : i32
    return %c0_i32, %c0_i32_0 : i32, i32
  }
  func.func @transform_3(%arg0: i32) -> (i32, i32) {
    %c0_i32 = arith.constant 0 : i32
    %c0_i32_0 = arith.constant 0 : i32
    %c0_i32_1 = arith.constant 0 : i32
    return %c0_i32, %c0_i32_0 : i32, i32
  }
  func.func @transform_4(%arg0: i32) -> (i32, i32) {
    %c0_i32 = arith.constant 0 : i32
    %c0_i32_0 = arith.constant 0 : i32
    %c0_i32_1 = arith.constant 0 : i32
    return %c0_i32, %c0_i32_0 : i32, i32
  }
  func.func @transform_5(%arg0: i32) -> (i32, i32, i32) {
    %c0_i32 = arith.constant 0 : i32
    %c0_i32_0 = arith.constant 0 : i32
    %c0_i32_1 = arith.constant 0 : i32
    %c0_i32_2 = arith.constant 0 : i32
    return %c0_i32, %c0_i32_0, %c0_i32_1 : i32, i32, i32
  }
  func.func @transform_6(%arg0: i32) -> (i32, i32) {
    %c0_i32 = arith.constant 0 : i32
    %c0_i32_0 = arith.constant 0 : i32
    %c0_i32_1 = arith.constant 0 : i32
    return %c0_i32, %c0_i32_0 : i32, i32
  }
  func.func @transform_7(%arg0: i32) -> (i32, i32) {
    %c0_i32 = arith.constant 0 : i32
    %c0_i32_0 = arith.constant 0 : i32
    %c0_i32_1 = arith.constant 0 : i32
    return %c0_i32, %c0_i32_0 : i32, i32
  }
  func.func @transform_8(%arg0: i32) -> (i32, i32) {
    %c0_i32 = arith.constant 0 : i32
    %c0_i32_0 = arith.constant 0 : i32
    %c0_i32_1 = arith.constant 0 : i32
    return %c0_i32, %c0_i32_0 : i32, i32
  }
}

</mosaic_0001>

<bundles_post_ra>
// kernel: bert_classifier_forward.6
= control target key start
LH: loop header
LB: loop body
LE: loop exit
PB: predicated region body
PF: predicated region fallthrough
CT: control target
= control target key end

     0   :  { %vm16_vm0 = vcmask 261120   ;;  %s118_s0 = inlined_call_operand.vmem [shape: f32[16,32], index: 0, kind: input, shape index: {}]   ;;  %s119_s1 = inlined_call_operand.vmem [shape: f32[1,32], index: 1, kind: input, shape index: {}]   ;;  %s120_s2 = inlined_call_operand.vmem [shape: f32[1,32], index: 2, kind: input, shape index: {}]   ;;  %s121_s3 = inlined_call_operand.vmem [shape: f32[16,32], index: 3, kind: output, shape index: {}]  }
   0x1   :  { %v14_v0 = vld [vmem:[%s118_s0] sm:$0xff]  ;;  %v15_v1 = vld [vmem:[%s118_s0 + $0x8] sm:$0xff] }
   0x2   :  { %v17_v2 = vsel %vm16_vm0, %v14_v0, 0.0  ;;  %v20_v3 = vsel %vm16_vm0, %v15_v1, 0.0  ;;  %v68_v21 = vld [vmem:[%s119_s1] ss:$0 sm:$0xff] }
   0x3   :  { %18 = vadd.xlane.f32.xlu0 %v17_v2  ;;  %v69_v23 = vld [vmem:[%s120_s2] ss:$0 sm:$0xff] }
   0x7   :  { %21 = vadd.xlane.f32.xlu0 %v20_v3 }
  0x90   :  { %v19_v4 = vpop.xlane.xlu0 %18 }
  0x91   :  { %v24_v5 = vmul.f32 0.03125, %v19_v4 }
  0x93   :  { %v26_v6 = vsub.f32 %v14_v0, %v24_v5 }
  0x94   :  { %v22_v7 = vpop.xlane.xlu0 %21 }
  0x95   :  { %v25_v8 = vmul.f32 0.03125, %v22_v7  ;;  %v28_v9 = vmul.f32 %v26_v6, %v26_v6 }
  0x97   :  { %v27_v10 = vsub.f32 %v15_v1, %v25_v8  ;;  %v30_v11 = vsel %vm16_vm0, %v28_v9, 0.0 }
  0x98   :  { %31 = vadd.xlane.f32.xlu1 %v30_v11 }
  0x99   :  { %v29_v12 = vmul.f32 %v27_v10, %v27_v10 }
  0x9b   :  { %v33_v13 = vsel %vm16_vm0, %v29_v12, 0.0 }
  0x9c   :  { %34 = vadd.xlane.f32.xlu1 %v33_v13 }
 0x125   :  { %v32_v14 = vpop.xlane.xlu1 %31 }
 0x126   :  { %v36_v15 = vmul.f32 0.03125, %v32_v14 }
 0x128   :  { %v38_v16 = vadd.f32 1e-12, %v36_v15 }
 0x129   :  { %v35_v17 = vpop.xlane.xlu1 %34 }
 0x12a   :  { %70 = vrsqrt.f32 %v38_v16  ;;  %v37_v18 = vmul.f32 0.03125, %v35_v17 }
 0x12c   :  { %v39_v19 = vadd.f32 1e-12, %v37_v18 }
 0x12e   :  { %72 = vrsqrt.f32 %v39_v19 }
 0x134   :  { %v71_v20 = vpop.eup %70 }
 0x135   :  { %v42_v22 = vmul.f32 %v71_v20, %v26_v6 }
 0x137   :  { %v51_v24 = vmul.f32 %v68_v21, %v42_v22 }
 0x138   :  { %v73_v25 = vpop.eup %72 }
 0x139   :  { %v60_v26 = vadd.f32 %v69_v23, %v51_v24  ;;  %v43_v27 = vmul.f32 %v73_v25, %v27_v10 }
 0x13b   :  { %62 = vst.msk [vmem:[%s121_s3] sm:$0xff] %vm16_vm0, %v60_v26  ;;  %v52_v28 = vmul.f32 %v68_v21, %v43_v27 }
 0x13d   :  { %v61_v29 = vadd.f32 %v69_v23, %v52_v28 }
 0x13f   :  { %63 = vst.msk [vmem:[%s121_s3 + $0x8] sm:$0xff] %vm16_vm0, %v61_v29 }

// kernel: bert_classifier_forward.8
= control target key start
LH: loop header
LB: loop body
LE: loop exit
PB: predicated region body
PF: predicated region fallthrough
CT: control target
= control target key end

     0   :  { %v302_v0 = vmov 0.0   ;;  %vm303_vm0 = vmmov 0   ;;  %vm53_vm1 = vcmask 261120   ;;  %vm148_vm2 = vcmask 523264   ;;  %s393_s1 = inlined_call_operand.vmem [shape: bf16[32,64], index: 1, kind: input, shape index: {}]   ;;  %s394_s0 = inlined_call_operand.vmem [shape: f32[16,32], index: 0, kind: input, shape index: {}]   ;;  %s395_s3 = inlined_call_operand.vmem [shape: bf16[64,32], index: 3, kind: input, shape index: {}]   ;;  %s396_s2 = inlined_call_operand.vmem [shape: f32[1,64], index: 2, kind: input, shape index: {}]   ;;  %s397_s4 = inlined_call_operand.vmem [shape: f32[1,32], index: 4, kind: input, shape index: {}]   ;;  %s398_s5 = inlined_call_operand.vmem [shape: f32[1,32], index: 5, kind: input, shape index: {}]   ;;  %s399_s6 = inlined_call_operand.vmem [shape: f32[1,32], index: 6, kind: input, shape index: {}]   ;;  %s400_s7 = inlined_call_operand.vmem [shape: f32[16,32], index: 7, kind: output, shape index: {}]  }
   0x1   :  { %266 = vmatprep.subr.bf16.mxu0 %v302_v0  ;;  %v288_v1 = vld [vmem:[%s393_s1] sm:$0xff]   ;;  %270 = vmatprep.mubr.msk.bf16.mxu0 %vm303_vm0, %v302_v0  ;;  %v289_v2 = vld [vmem:[%s393_s1 + $0x8] sm:$0xff]   ;;  %v292_v8 = vld [vmem:[%s395_s3 + $0x10] sm:$0xff]  }
   0x2   :  { %274 = vmatprep.subr.bf16.mxu1 %v302_v0  ;;  %282 = vmatprep.mubr.msk.bf16.mxu1 %vm303_vm0, %v302_v0  ;;  %v27_v3 = vld [vmem:[%s394_s0] sm:$0xff]  ;;  %v28_v4 = vld [vmem:[%s394_s0 + $0x8] sm:$0xff]  ;;  %v293_v9 = vld [vmem:[%s395_s3 + $0x18] sm:$0xff]  }
   0x3   :  { %267 = vmatpush3.bf16.msra.mxu0 %v288_v1  ;;  %v29_v5 = vpack.c.bf16 %v28_v4, %v27_v3  ;;  %v290_v6 = vld [vmem:[%s395_s3] sm:$0xff]   ;;  %v291_v7 = vld [vmem:[%s395_s3 + $0x8] sm:$0xff]  }
   0x4   :  { %268 = vmatprep.subr.bf16.mxu0 %v302_v0  ;;  %275 = vmatpush3.bf16.msra.mxu1 %v290_v6  ;;  %v246_v10 = vld [vmem:[%s396_s2] ss:$0 sm:$0xff] }
   0x5   :  { %276 = vmatprep.subr.bf16.mxu1 %v302_v0  ;;  %v250_v28 = vld [vmem:[%s397_s4] ss:$0 sm:$0xff] }
   0x6   :  { %v256_v56 = vld [vmem:[%s398_s5] ss:$0 sm:$0xff] }
   0x7   :  { %269 = vmatpush3.bf16.msra.mxu0 %v289_v2  ;;  %v257_v58 = vld [vmem:[%s399_s6] ss:$0 sm:$0xff] }
   0x8   :  { %277 = vmatpush3.bf16.msra.mxu1 %v291_v7 }
   0x9   :  { %278 = vmatprep.subr.bf16.mxu1 %v302_v0 }
   0xa   :  { %271 = vmatmul.mubr.msk.bf16.vlgmr.msra.gmra.mrb[0].mxu0 %vm53_vm1, %v29_v5 }
   0xc   :  { %279 = vmatpush3.bf16.msra.mxu1 %v292_v8 }
   0xd   :  { %280 = vmatprep.subr.bf16.mxu1 %v302_v0 }
  0x10   :  { %281 = vmatpush3.bf16.msra.mxu1 %v293_v9 }
  0xdd   :  { %v91_v11 = vpop.f32.mrb[0].mxu0 }
  0xde   :  { %v92_v12 = vadd.f32 %v246_v10, %v91_v11  ;;  %v272_v13 = vpop.f32.mrb[1].mxu0 }
  0xdf   :  { %v94_v14 = vpop.f32.mrb[2].mxu0 }
  0xe0   :  { %v100_v15 = vmul.f32 0.70710677, %v92_v12  ;;  %v95_v16 = vadd.f32 %v246_v10, %v94_v14  ;;  %v273_v17 = vpop.f32.mrb[3].mxu0  ;;  %v98_v22 = vmul.f32 0.5, %v92_v12 }
  0xe2   :  { %294 = verf.f32 %v100_v15  ;;  %v101_v18 = vmul.f32 0.70710677, %v95_v16  ;;  %v99_v23 = vmul.f32 0.5, %v95_v16 }
  0xe4   :  { %296 = verf.f32 %v101_v18 }
  0xec   :  { %v295_v19 = vpop.eup %294 }
  0xed   :  { %v104_v20 = vadd.f32 1.0, %v295_v19 }
  0xee   :  { %v297_v21 = vpop.eup %296 }
  0xef   :  { %v105_v24 = vadd.f32 1.0, %v297_v21  ;;  %v106_v25 = vmul.f32 %v104_v20, %v98_v22 }
  0xf1   :  { %v107_v26 = vmul.f32 %v105_v24, %v99_v23 }
  0xf3   :  { %v108_v27 = vpack.c.bf16 %v107_v26, %v106_v25 }
  0xf5   :  { %283 = vmatmul.mubr.msk.bf16.vlgmr.msra.gmra.mrb[0].mxu1 %vm148_vm2, %v108_v27 }
 0x1c8   :  { %v186_v29 = vpop.f32.mrb[0].mxu1 }
 0x1c9   :  { %v187_v30 = vadd.f32 %v250_v28, %v186_v29  ;;  %v284_v31 = vpop.f32.mrb[1].mxu1 }
 0x1ca   :  { %v189_v32 = vpop.f32.mrb[2].mxu1 }
 0x1cb   :  { %v190_v33 = vadd.f32 %v250_v28, %v189_v32  ;;  %v285_v34 = vpop.f32.mrb[3].mxu1  ;;  %v193_v35 = vadd.f32 %v187_v30, %v27_v3 }
 0x1cd   :  { %v195_v36 = vsel %vm53_vm1, %v193_v35, 0.0  ;;  %v194_v37 = vadd.f32 %v190_v33, %v28_v4 }
 0x1ce   :  { %196 = vadd.xlane.f32.xlu0 %v195_v36 }
 0x1cf   :  { %v198_v38 = vsel %vm53_vm1, %v194_v37, 0.0 }
 0x1d2   :  { %199 = vadd.xlane.f32.xlu0 %v198_v38 }
 0x25b   :  { %v197_v39 = vpop.xlane.xlu0 %196 }
 0x25c   :  { %v202_v40 = vmul.f32 0.03125, %v197_v39 }
 0x25e   :  { %v204_v41 = vsub.f32 %v193_v35, %v202_v40 }
 0x25f   :  { %v200_v42 = vpop.xlane.xlu0 %199 }
 0x260   :  { %v203_v43 = vmul.f32 0.03125, %v200_v42  ;;  %v206_v44 = vmul.f32 %v204_v41, %v204_v41 }
 0x262   :  { %v205_v45 = vsub.f32 %v194_v37, %v203_v43  ;;  %v208_v46 = vsel %vm53_vm1, %v206_v44, 0.0 }
 0x263   :  { %209 = vadd.xlane.f32.xlu1 %v208_v46 }
 0x264   :  { %v207_v47 = vmul.f32 %v205_v45, %v205_v45 }
 0x266   :  { %v211_v48 = vsel %vm53_vm1, %v207_v47, 0.0 }
 0x267   :  { %212 = vadd.xlane.f32.xlu1 %v211_v48 }
 0x2f0   :  { %v210_v49 = vpop.xlane.xlu1 %209 }
 0x2f1   :  { %v214_v50 = vmul.f32 0.03125, %v210_v49 }
 0x2f3   :  { %v216_v51 = vadd.f32 1e-12, %v214_v50 }
 0x2f4   :  { %v213_v52 = vpop.xlane.xlu1 %212 }
 0x2f5   :  { %298 = vrsqrt.f32 %v216_v51  ;;  %v215_v53 = vmul.f32 0.03125, %v213_v52 }
 0x2f7   :  { %v217_v54 = vadd.f32 1e-12, %v215_v53 }
 0x2f9   :  { %300 = vrsqrt.f32 %v217_v54 }
 0x2ff   :  { %v299_v55 = vpop.eup %298 }
 0x300   :  { %v220_v57 = vmul.f32 %v299_v55, %v204_v41 }
 0x302   :  { %v229_v59 = vmul.f32 %v256_v56, %v220_v57 }
 0x303   :  { %v301_v60 = vpop.eup %300 }
 0x304   :  { %v238_v61 = vadd.f32 %v257_v58, %v229_v59  ;;  %v221_v62 = vmul.f32 %v301_v60, %v205_v45 }
 0x306   :  { %240 = vst.msk [vmem:[%s400_s7] sm:$0xff] %vm53_vm1, %v238_v61  ;;  %v230_v63 = vmul.f32 %v256_v56, %v221_v62 }
 0x308   :  { %v239_v0 = vadd.f32 %v257_v58, %v230_v63 }
 0x30a   :  { %241 = vst.msk [vmem:[%s400_s7 + $0x8] sm:$0xff] %vm53_vm1, %v239_v0 }

// kernel: bert_classifier_forward.11
= control target key start
LH: loop header
LB: loop body
LE: loop exit
PB: predicated region body
PF: predicated region fallthrough
CT: control target
= control target key end

     0   :  { %v243_v1 = vmov 0.0   ;;  %vm244_vm0 = vmmov 0   ;;  %vm27_vm1 = vcmask 1040384   ;;  %s314_s0 = inlined_call_operand.vmem [shape: f32[16,32], index: 0, kind: input, shape index: {}]   ;;  %s315_s1 = inlined_call_operand.vmem [shape: bf16[32,32], index: 1, kind: input, shape index: {}]   ;;  %s316_s2 = inlined_call_operand.vmem [shape: f32[1,32], index: 2, kind: input, shape index: {}]   ;;  %s317_s3 = inlined_call_operand.vmem [shape: bf16[32,128], index: 3, kind: input, shape index: {}]   ;;  %s318_s4 = inlined_call_operand.vmem [shape: f32[1,128], index: 4, kind: input, shape index: {}]   ;;  %s319_s5 = inlined_call_operand.hbm [shape: f32[2,128], index: 5, kind: output, shape index: {}]  }
   0x1   :  { %v213_v0 = vld [vmem:[%s315_s1] sm:$0xff]   ;;  %194 = vmatprep.subr.bf16.mxu0 %v243_v1  ;;  %202 = vmatprep.subr.bf16.mxu1 %v243_v1  ;;  %v214_v2 = vld [vmem:[%s315_s1 + $0x8] sm:$0xff]  }
   0x2   :  { %195 = vmatpush3.bf16.msra.mxu0 %v213_v0  ;;  %198 = vmatprep.mubr.msk.bf16.mxu0 %vm244_vm0, %v243_v1  ;;  %v22_v3 = vld [vmem:[%s314_s0] sm:$0xff]  ;;  %v23_v4 = vld [vmem:[%s314_s0 + $0x8] sm:$0xff] }
   0x3   :  { %196 = vmatprep.subr.bf16.mxu0 %v243_v1  ;;  %v25_v5 = vrot.slane %v23_v4, 7  ;;  %206 = vmatprep.mubr.msk.bf16.mxu1 %vm244_vm0, %v243_v1 }
   0x4   :  { %10 = vsyncpa [#allocation3], 0  ;;  %vm53_vm2 = vcmask 261120   ;;  %v215_v8 = vld [vmem:[%s317_s3] sm:$0xff]   ;;  %v216_v9 = vld [vmem:[%s317_s3 + $0x8] sm:$0xff]   ;;  %s245_s3 = smov [#allocation2]  }
   0x5   :  { %v28_v6 = vsel %vm27_vm1, %v22_v3, %v25_v5  ;;  %203 = vmatpush3.bf16.msra.mxu1 %v215_v8  ;;  %v180_v10 = vld [vmem:[%s316_s2] ss:$0 sm:$0xff]  ;;  %s172_s7 = sshll.u32 %s245_s3, 4  ;;  %s173_s7 = int_to_ptr.vmem [resolvable:$true] %s172_s7 }
   0x6   :  { %197 = vmatpush3.bf16.msra.mxu0 %v214_v2  ;;  %v29_v7 = vpack.c.bf16 %v28_v6, %v28_v6  ;;  %204 = vmatprep.subr.bf16.mxu1 %v243_v1  ;;  %v184_v18 = vld [vmem:[%s318_s4] ss:$0 sm:$0xff]  ;;  %s219_s2 = scalar_lea.vmem %s173_s7, 32  ;;  %p224_p1 = scmp.lt.s32.totalorder %s173_s7, %s173_s7 }
   0x7   :  { %p220_p0 = scmp.ne.s32.totalorder %s173_s7, %s219_s2  ;;  %p225_p2 = scmp.lt.s32.totalorder %s219_s2, %s219_s2 }
   0x9   :  { %199 = vmatmul.mubr.msk.bf16.vlgmr.msra.gmra.mrb[0].mxu0 %vm53_vm2, %v29_v7  ;;  %205 = vmatpush3.bf16.msra.mxu1 %v216_v9  ;;  %p226_p3 = por %p225_p2, %p224_p1 }
   0xb   :  { %p227_p4 = pnand %p226_p3, %p220_p0 }
  0xdc   :  { %v91_v11 = vpop.f32.mrb[0].mxu0 }
  0xdd   :  { %v92_v12 = vadd.f32 %v180_v10, %v91_v11  ;;  %v200_v13 = vpop.f32.mrb[1].mxu0 }
  0xde   :  { %v94_v14 = vpop.f32.mrb[2].mxu0 }
  0xdf   :  { %217 = vtanh.f32 %v92_v12  ;;  %v201_v15 = vpop.f32.mrb[3].mxu0 }
  0xe9   :  { %v218_v16 = vpop.eup %217 }
  0xea   :  { %v98_v17 = vpack.c.bf16 %v218_v16, %v218_v16 }
  0xec   :  { %207 = vmatmul.mubr.msk.bf16.vlgmr.msra.gmra.mrb[0].mxu1 %vm53_vm2, %v98_v17 }
 0x1bf   :  { %v159_v19 = vpop.f32.mrb[0].mxu1 }
 0x1c0   :  { %v160_v20 = vadd.f32 %v184_v18, %v159_v19  ;;  %v208_v21 = vpop.f32.mrb[1].mxu1 }
 0x1c1   :  { %v162_v22 = vpop.f32.mrb[2].mxu1 }
 0x1c2   :  { %165 = vst [vmem:[#allocation2] sm:$0x3] %v160_v20  ;;  %v209_v23 = vpop.f32.mrb[3].mxu1 }
 0x1c3   :  { %230 = shalt.err (!%p227_p4)
}
 0x1c4   :  { %s231_s4 = scalar_lea.hbm %s319_s5, 32 }
 0x1c5   :  { %p232_p5 = scmp.ne.s32.totalorder %s319_s5, %s231_s4  ;;  %p235_p6 = scmp.lt.u32.totalorder %s231_s4, %s319_s5 }
 0x1c7   :  { %p237_p7 = pnand %p235_p6, %p232_p5 }
 0x1c9   :  { %240 = shalt.err (!%p237_p7)
}
 0x1ca   :  { %175 = dma.vmem_to_hbm [thread:$0]  %s173_s7, 32, %s319_s5, [#allocation3]  }
 0x1cb   :  { %241 = dma.done.wait [#allocation3], 32  }
 0x1cc   :  { %242 = vsyncadd [#allocation3], 4294967264 }
 0x1cd   :  { %179 = vsyncpa [#allocation3], 1 }

// kernel: bert_classifier_forward.7
= control target key start
LH: loop header
LB: loop body
LE: loop exit
PB: predicated region body
PF: predicated region fallthrough
CT: control target
= control target key end

     0   :  { %v1097_v0 = vmov 0.0   ;;  %vm1098_vm0 = vmmov 0   ;;  %vm56_vm1 = vcmask 261120   ;;  %s1100_s14 = smov 96   ;;  %s1101_s15 = smov 80   ;;  %vm109_vm2 = vcmask 130048   ;;  %s1304_s1 = inlined_call_operand.vmem [shape: bf16[32,96], index: 1, kind: input, shape index: {}]   ;;  %s1305_s0 = inlined_call_operand.vmem [shape: f32[16,32], index: 0, kind: input, shape index: {}]   ;;  %s1306_s2 = inlined_call_operand.vmem [shape: f32[1,96], index: 2, kind: input, shape index: {}]   ;;  %s1307_s5 = inlined_call_operand.vmem [shape: f32[2,1,8], index: 5, kind: input, shape index: {}]   ;;  %s1308_s3 = inlined_call_operand.vmem [shape: bf16[32,32], index: 3, kind: input, shape index: {}]   ;;  %s1309_s4 = inlined_call_operand.vmem [shape: f32[1,32], index: 4, kind: input, shape index: {}]   ;;  %s1310_s6 = inlined_call_operand.vmem [shape: f32[1,32], index: 6, kind: input, shape index: {}]   ;;  %s1311_s7 = inlined_call_operand.vmem [shape: f32[1,32], index: 7, kind: input, shape index: {}]   ;;  %s1312_s8 = inlined_call_operand.vmem [shape: f32[16,32], index: 8, kind: output, shape index: {}]  }
   0x1   :  { %990 = vmatprep.subr.bf16.mxu0 %v1097_v0  ;;  %v1073_v1 = vld [vmem:[%s1304_s1] sm:$0xff]   ;;  %994 = vmatprep.mubr.msk.bf16.mxu0 %vm1098_vm0, %v1097_v0  ;;  %v1074_v2 = vld [vmem:[%s1304_s1 + $0x8] sm:$0xff]   ;;  %vm192_vm3 = vcmask 64512   ;;  %s1102_s17 = smov 48   ;;  %s1103_s18 = smov 64   ;;  %vm212_vm4 = vcmask 1043456  }
   0x2   :  { %998 = vmatprep.subr.mxu1 %v1097_v0  ;;  %1000 = vmatprep.mubr.msk.f32.mxu1 %vm1098_vm0, %v1097_v0  ;;  %v1164_v3 = vld [vmem:[%s1305_s0] sm:$0xff]  ;;  %v1169_v4 = vld [vmem:[%s1305_s0 + $0x8] sm:$0xff]  ;;  %s1099_s0 = smov 112  }
   0x3   :  { %991 = vmatpush3.bf16.msra.mxu0 %v1073_v1  ;;  %v32_v5 = vpack.c.bf16 %v1169_v4, %v1164_v3  ;;  %v935_v6 = vld [vmem:[%s1306_s2] ss:$0 sm:$0xff]  ;;  %v1231_v51 = vld [vmem:[%s1308_s3 + $0x8] sm:$0xff]  }
   0x4   :  { %992 = vmatprep.subr.bf16.mxu0 %v1097_v0  ;;  %v941_v17 = vld [vmem:[%s1307_s5] ss:$0 sm:$0xff] }
   0x5   :  { %v1221_v49 = vld [vmem:[%s1308_s3] sm:$0xff]  }
   0x7   :  { %993 = vmatpush3.bf16.msra.mxu0 %v1074_v2 }
   0x8   :  { %1009 = vmatprep.subr.mxu0 %v1097_v0 }
   0xa   :  { %995 = vmatmul.mubr.msk.bf16.vlgmr.msra.gmra.mrb[0].mxu0 %vm56_vm1, %v32_v5 }
   0xb   :  { %1011 = vmatprep.mubr.msk.f32.mxu0 %vm1098_vm0, %v1097_v0 }
  0xdd   :  { %v94_v7 = vpop.f32.mrb[0].mxu0 }
  0xde   :  { %v95_v8 = vadd.f32 %v935_v6, %v94_v7  ;;  %v996_v9 = vpop.f32.mrb[1].mxu0 }
  0xdf   :  { %v97_v10 = vpop.f32.mrb[2].mxu0 }
  0xe0   :  { %v1181_v11 = vadd.f32 %v935_v6, %v97_v10  ;;  %257 = vrot.lane.b32.xlu1 %v95_v8, %s1099_s0  ;;  %107 = vrot.lane.b32.xlu0 %v95_v8, %s1100_s14  ;;  %v997_v12 = vpop.f32.mrb[3].mxu0  ;;  %v205_v37 = vpack.c.bf16 %v95_v8, %v95_v8  ;;  %v953_v10 = vld [vmem:[%s1307_s5 + $0x1] ss:$0 sm:$0xff] }
  0xe4   :  { %259 = vrot.lane.b32.xlu0 %v95_v8, %s1101_s15 }
 0x152   :  { %v108_v13 = vpop.permute.xlu0 %107  ;;  %v258_v15 = vpop.permute.xlu1 %257 }
 0x153   :  { %999 = vmatpush3.xpose.msk.msra.mxu1 %vm109_vm2, %v108_v13 }
 0x154   :  { %1003 = vmatprep.subr.bf16.mxu1 %v1097_v0 }
 0x156   :  { %1001 = vmatmul.mubr.msk.f32.vlgmr.msra.gmra.mrb[0].mxu1 %vm109_vm2, %v95_v8  ;;  %v260_v14 = vpop.permute.xlu0 %259 }
 0x157   :  { %1010 = vmatpush3.xpose.msk.msra.mxu0 %vm109_vm2, %v260_v14  ;;  %1005 = vmatprep.mubr.msk.bf16.mxu1 %vm1098_vm0, %v1097_v0 }
 0x158   :  { %1020 = vmatprep.subr.bf16.mxu0 %v1097_v0 }
 0x15a   :  { %1012 = vmatmul.mubr.msk.f32.vlgmr.msra.gmra.mrb[4].mxu0 %vm109_vm2, %v258_v15 }
 0x15b   :  { %1022 = vmatprep.mubr.msk.bf16.mxu0 %vm1098_vm0, %v1097_v0  ;;  %1021 = vmatpush3.bf16.msra.mxu0 %v1231_v51 }
 0x15c   :  { %1032 = vmatprep.subr.mxu0 %v1097_v0 }
 0x229   :  { %v180_v16 = vpop.f32.mrb[0].mxu1 }
 0x22a   :  { %v184_v18 = vmul.f32 0.25, %v180_v16  ;;  %v1002_v19 = vpop.f32.mrb[1].mxu1 }
 0x22c   :  { %v191_v20 = vadd.f32 %v941_v17, %v184_v18 }
 0x22d   :  { %v331_v21 = vpop.f32.mrb[4].mxu0 }
 0x22e   :  { %v335_v22 = vmul.f32 0.25, %v331_v21  ;;  %v1013_v23 = vpop.f32.mrb[5].mxu0  ;;  %v193_v24 = vsel %vm192_vm3, %v191_v20, -inf }
 0x22f   :  { %194 = vmax.xlane.f32.xlu1 %v193_v24 }
 0x230   :  { %v336_v25 = vadd.f32 %v941_v17, %v335_v22 }
 0x232   :  { %v337_v26 = vsel %vm192_vm3, %v336_v25, -inf }
 0x233   :  { %338 = vmax.xlane.f32.xlu0 %v337_v26  ;;  %v1263_v26 = vld [vmem:[%s1309_s4] ss:$0 sm:$0xff] }
 0x2bc   :  { %v195_v27 = vpop.xlane.xlu1 %194 }
 0x2bd   :  { %v196_v28 = vsub.f32 %v191_v20, %v195_v27 }
 0x2bf   :  { %v197_v29 = vmul.f32 1.442695, %v196_v28 }
 0x2c0   :  { %v339_v30 = vpop.xlane.xlu0 %338 }
 0x2c1   :  { %1077 = vpow2.f32 %v197_v29  ;;  %v340_v31 = vsub.f32 %v336_v25, %v339_v30  ;;  %v595_v25 = vpack.c.bf16 %v1181_v11, %v1181_v11 }
 0x2c3   :  { %v341_v32 = vmul.f32 1.442695, %v340_v31 }
 0x2c5   :  { %1079 = vpow2.f32 %v341_v32 }
 0x2cb   :  { %v1078_v33 = vpop.eup %1077 }
 0x2cc   :  { %v199_v34 = vsel %vm192_vm3, %v1078_v33, 0.0 }
 0x2cd   :  { %200 = vadd.xlane.f32.xlu0 %v199_v34 }
 0x2cf   :  { %v1080_v35 = vpop.eup %1079 }
 0x2d0   :  { %v343_v36 = vsel %vm192_vm3, %v1080_v35, 0.0 }
 0x2d1   :  { %344 = vadd.xlane.f32.xlu1 %v343_v36 }
 0x2e2   :  { %349 = vrot.lane.b32.xlu1 %v205_v37, %s1102_s17 }
 0x2e3   :  { %207 = vrot.lane.b32.xlu0 %v205_v37, %s1103_s18 }
 0x2e6   :  { %499 = vrot.lane.b32.xlu1 %v1181_v11, %s1100_s14 }
 0x2e7   :  { %648 = vrot.lane.b32.xlu0 %v1181_v11, %s1101_s15 }
 0x2ea   :  { %646 = vrot.lane.b32.xlu1 %v1181_v11, %s1099_s0 }
 0x35a   :  { %v201_v38 = vpop.xlane.xlu0 %200 }
 0x35b   :  { %1081 = vrcp.f32 %v201_v38 }
 0x35e   :  { %v345_v39 = vpop.xlane.xlu1 %344  ;;  %v208_v40 = vpop.permute.xlu0 %207 }
 0x35f   :  { %1083 = vrcp.f32 %v345_v39  ;;  %v214_v41 = vsel %vm212_vm4, %v208_v40, 0 }
 0x360   :  { %1004 = vmatpush3.bf16.msra.mxu1 %v214_v41 }
 0x361   :  { %1014 = vmatprep.subr.bf16.mxu1 %v1097_v0 }
 0x362   :  { %v350_v44 = vpop.permute.xlu1 %349  ;;  %v649_v56 = vpop.permute.xlu0 %648 }
 0x363   :  { %v355_v47 = vsel %vm212_vm4, %v350_v44, 0 }
 0x365   :  { %v1082_v42 = vpop.eup %1081 }
 0x366   :  { %v203_v43 = vmul.f32 %v1082_v42, %v1078_v33  ;;  %v500_v58 = vpop.permute.xlu1 %499 }
 0x368   :  { %v204_v45 = vpack.c.bf16 %v203_v43, %v203_v43 }
 0x369   :  { %v1084_v46 = vpop.eup %1083 }
 0x36a   :  { %1006 = vmatmul.mubr.msk.bf16.vlgmr.msra.gmra.mrb[4].mxu1 %vm192_vm3, %v204_v45  ;;  %v347_v48 = vmul.f32 %v1084_v46, %v1080_v35  ;;  %v647_v62 = vpop.permute.xlu1 %646 }
 0x36b   :  { %1015 = vmatpush3.bf16.msra.mxu1 %v355_v47  ;;  %1016 = vmatprep.mubr.msk.bf16.mxu1 %vm1098_vm0, %v1097_v0 }
 0x36c   :  { %1026 = vmatprep.subr.bf16.mxu1 %v1097_v0  ;;  %v348_v50 = vpack.c.bf16 %v347_v48, %v347_v48 }
 0x372   :  { %1017 = vmatmul.mubr.msk.bf16.vlgmr.msra.gmra.mrb[8].mxu1 %vm192_vm3, %v348_v50 }
 0x373   :  { %1027 = vmatpush3.bf16.msra.mxu1 %v1221_v49  ;;  %1028 = vmatprep.mubr.msk.bf16.mxu1 %vm1098_vm0, %v1097_v0 }
 0x374   :  { %1043 = vmatprep.subr.mxu1 %v1097_v0 }
 0x43d   :  { %v250_v52 = vpop.f32.mrb[4].mxu1 }
 0x43e   :  { %v256_v53 = vpack.c.bf16 %v250_v52, %v250_v52  ;;  %v1007_v54 = vpop.f32.mrb[5].mxu1 }
 0x43f   :  { %v253_v55 = vpop.f32.mrb[6].mxu1 }
 0x440   :  { %v1008_v57 = vpop.f32.mrb[7].mxu1  ;;  %1029 = vmatmul.mubr.msk.bf16.vlgmr.msra.gmra.mrb[12].mxu1 %vm109_vm2, %v256_v53 }
 0x441   :  { %1044 = vmatpush3.xpose.msk.msra.mxu1 %vm109_vm2, %v649_v56  ;;  %1045 = vmatprep.mubr.msk.f32.mxu1 %vm1098_vm0, %v1097_v0 }
 0x442   :  { %1048 = vmatprep.subr.bf16.mxu1 %v1097_v0 }
 0x445   :  { %v391_v59 = vpop.f32.mrb[8].mxu1 }
 0x446   :  { %v397_v60 = vpack.c.bf16 %v391_v59, %v391_v59  ;;  %v1018_v61 = vpop.f32.mrb[9].mxu1 }
 0x447   :  { %v394_v63 = vpop.f32.mrb[10].mxu1 }
 0x448   :  { %v1019_v1 = vpop.f32.mrb[11].mxu1  ;;  %1023 = vmatmul.mubr.msk.bf16.vlgmr.msra.gmra.mrb[8].mxu0 %vm109_vm2, %v397_v60  ;;  %1046 = vmatmul.mubr.msk.f32.vlgmr.msra.gmra.mrb[2].mxu1 %vm109_vm2, %v647_v62  ;;  %v962_v62 = vld [vmem:[%s1311_s7] ss:$0 sm:$0xff] }
 0x449   :  { %1033 = vmatpush3.xpose.msk.msra.mxu0 %vm109_vm2, %v500_v58  ;;  %1034 = vmatprep.mubr.msk.f32.mxu0 %vm1098_vm0, %v1097_v0 }
 0x44a   :  { %1037 = vmatprep.subr.bf16.mxu0 %v1097_v0  ;;  %1050 = vmatprep.mubr.msk.bf16.mxu1 %vm1098_vm0, %v1097_v0 }
 0x450   :  { %1035 = vmatmul.mubr.msk.f32.vlgmr.msra.gmra.mrb[6].mxu0 %vm109_vm2, %v1181_v11 }
 0x451   :  { %1039 = vmatprep.mubr.msk.bf16.mxu0 %vm1098_vm0, %v1097_v0 }
 0x513   :  { %v490_v2 = vpop.f32.mrb[12].mxu1 }
 0x514   :  { %v1030_v5 = vpop.f32.mrb[13].mxu1 }
 0x515   :  { %v493_v6 = vpop.f32.mrb[14].mxu1 }
 0x516   :  { %v1031_v7 = vpop.f32.mrb[15].mxu1 }
 0x51b   :  { %v441_v8 = vpop.f32.mrb[8].mxu0  ;;  %v720_v9 = vpop.f32.mrb[2].mxu1 }
 0x51c   :  { %v491_v12 = vadd.f32 %v490_v2, %v441_v8  ;;  %v724_v13 = vmul.f32 0.25, %v720_v9  ;;  %v1024_v14 = vpop.f32.mrb[9].mxu0  ;;  %v1047_v15 = vpop.f32.mrb[3].mxu1 }
 0x51d   :  { %v444_v16 = vpop.f32.mrb[10].mxu0 }
 0x51e   :  { %v1025_v17 = vpop.f32.mrb[11].mxu0  ;;  %v725_v18 = vadd.f32 %v953_v10, %v724_v13  ;;  %v880_v27 = vadd.f32 %v1263_v26, %v491_v12 }
 0x520   :  { %v726_v19 = vsel %vm192_vm3, %v725_v18, -inf  ;;  %v882_v28 = vadd.f32 %v880_v27, %v1164_v3 }
 0x521   :  { %727 = vmax.xlane.f32.xlu1 %v726_v19 }
 0x522   :  { %v884_v29 = vsel %vm56_vm1, %v882_v28, 0.0 }
 0x523   :  { %v571_v20 = vpop.f32.mrb[6].mxu0 }
 0x524   :  { %v575_v21 = vmul.f32 0.25, %v571_v20  ;;  %v1036_v22 = vpop.f32.mrb[7].mxu0 }
 0x526   :  { %v582_v23 = vadd.f32 %v953_v10, %v575_v21 }
 0x528   :  { %v583_v24 = vsel %vm192_vm3, %v582_v23, -inf }
 0x529   :  { %584 = vmax.xlane.f32.xlu0 %v583_v24 }
 0x532   :  { %597 = vrot.lane.b32.xlu1 %v595_v25, %s1103_s18 }
 0x556   :  { %885 = vadd.xlane.f32.xlu1 %v884_v29 }
 0x5ae   :  { %v728_v30 = vpop.xlane.xlu1 %727 }
 0x5af   :  { %v729_v31 = vsub.f32 %v725_v18, %v728_v30 }
 0x5b1   :  { %v730_v32 = vmul.f32 1.442695, %v729_v31 }
 0x5b2   :  { %v598_v33 = vpop.permute.xlu1 %597 }
 0x5b3   :  { %1085 = vpow2.f32 %v730_v32  ;;  %v603_v11 = vsel %vm212_vm4, %v598_v33, 0 }
 0x5b4   :  { %1038 = vmatpush3.bf16.msra.mxu0 %v603_v11 }
 0x5b5   :  { %1054 = vmatprep.subr.bf16.mxu0 %v1097_v0 }
 0x5b6   :  { %v585_v34 = vpop.xlane.xlu0 %584 }
 0x5b7   :  { %v586_v35 = vsub.f32 %v582_v23, %v585_v34 }
 0x5b9   :  { %v587_v36 = vmul.f32 1.442695, %v586_v35 }
 0x5bb   :  { %1087 = vpow2.f32 %v587_v36 }
 0x5bd   :  { %v1086_v37 = vpop.eup %1085 }
 0x5be   :  { %v732_v3 = vsel %vm192_vm3, %v1086_v37, 0.0 }
 0x5bf   :  { %733 = vadd.xlane.f32.xlu0 %v732_v3 }
 0x5c5   :  { %v1088_v38 = vpop.eup %1087 }
 0x5c6   :  { %v589_v39 = vsel %vm192_vm3, %v1088_v38, 0.0 }
 0x5c7   :  { %590 = vadd.xlane.f32.xlu0 %v589_v39 }
 0x5dd   :  { %738 = vrot.lane.b32.xlu0 %v595_v25, %s1102_s17 }
 0x5e3   :  { %v886_v40 = vpop.xlane.xlu1 %885 }
 0x5e4   :  { %v891_v41 = vmul.f32 0.03125, %v886_v40 }
 0x5e6   :  { %v893_v42 = vsub.f32 %v882_v28, %v891_v41 }
 0x5e8   :  { %v895_v43 = vmul.f32 %v893_v42, %v893_v42 }
 0x5ea   :  { %v897_v44 = vsel %vm56_vm1, %v895_v43, 0.0 }
 0x5eb   :  { %898 = vadd.xlane.f32.xlu1 %v897_v44 }
 0x64c   :  { %v734_v45 = vpop.xlane.xlu0 %733 }
 0x64d   :  { %1089 = vrcp.f32 %v734_v45 }
 0x654   :  { %v591_v46 = vpop.xlane.xlu0 %590 }
 0x655   :  { %1091 = vrcp.f32 %v591_v46 }
 0x657   :  { %v1090_v47 = vpop.eup %1089 }
 0x658   :  { %v736_v48 = vmul.f32 %v1090_v47, %v1086_v37  ;;  %v739_v50 = vpop.permute.xlu0 %738 }
 0x659   :  { %v744_v52 = vsel %vm212_vm4, %v739_v50, 0 }
 0x65a   :  { %1049 = vmatpush3.bf16.msra.mxu1 %v744_v52  ;;  %v737_v53 = vpack.c.bf16 %v736_v48, %v736_v48 }
 0x65b   :  { %1060 = vmatprep.subr.bf16.mxu1 %v1097_v0 }
 0x65d   :  { %1051 = vmatmul.mubr.msk.bf16.vlgmr.msra.gmra.mrb[16].mxu1 %vm192_vm3, %v737_v53 }
 0x65e   :  { %1061 = vmatpush3.bf16.msra.mxu1 %v1221_v49  ;;  %1062 = vmatprep.mubr.msk.bf16.mxu1 %vm1098_vm0, %v1097_v0  ;;  %v961_v49 = vld [vmem:[%s1310_s6] ss:$0 sm:$0xff] }
 0x65f   :  { %v1092_v54 = vpop.eup %1091 }
 0x660   :  { %v593_v55 = vmul.f32 %v1092_v54, %v1088_v38 }
 0x662   :  { %v594_v56 = vpack.c.bf16 %v593_v55, %v593_v55 }
 0x664   :  { %1040 = vmatmul.mubr.msk.bf16.vlgmr.msra.gmra.mrb[12].mxu0 %vm192_vm3, %v594_v56 }
 0x665   :  { %1055 = vmatpush3.bf16.msra.mxu0 %v1231_v51  ;;  %1056 = vmatprep.mubr.msk.bf16.mxu0 %vm1098_vm0, %v1097_v0 }
 0x678   :  { %v899_v57 = vpop.xlane.xlu1 %898 }
 0x679   :  { %v903_v58 = vmul.f32 0.03125, %v899_v57 }
 0x67b   :  { %v905_v59 = vadd.f32 1e-12, %v903_v58 }
 0x67d   :  { %1093 = vrsqrt.f32 %v905_v59 }
 0x687   :  { %v1094_v60 = vpop.eup %1093 }
 0x688   :  { %v909_v61 = vmul.f32 %v1094_v60, %v893_v42 }
 0x68a   :  { %v918_v63 = vmul.f32 %v961_v49, %v909_v61 }
 0x68c   :  { %v927_v1 = vadd.f32 %v962_v62, %v918_v63 }
 0x68e   :  { %929 = vst.msk [vmem:[%s1312_s8] sm:$0xff] %vm56_vm1, %v927_v1 }
 0x730   :  { %v780_v0 = vpop.f32.mrb[16].mxu1 }
 0x731   :  { %v786_v51 = vpack.c.bf16 %v780_v0, %v780_v0  ;;  %v1052_v2 = vpop.f32.mrb[17].mxu1 }
 0x732   :  { %v783_v5 = vpop.f32.mrb[18].mxu1 }
 0x733   :  { %v1053_v6 = vpop.f32.mrb[19].mxu1  ;;  %1057 = vmatmul.mubr.msk.bf16.vlgmr.msra.gmra.mrb[16].mxu0 %vm109_vm2, %v786_v51 }
 0x737   :  { %v639_v7 = vpop.f32.mrb[12].mxu0 }
 0x738   :  { %v645_v8 = vpack.c.bf16 %v639_v7, %v639_v7  ;;  %v1041_v9 = vpop.f32.mrb[13].mxu0 }
 0x739   :  { %v642_v10 = vpop.f32.mrb[14].mxu0 }
 0x73a   :  { %v1042_v12 = vpop.f32.mrb[15].mxu0  ;;  %1063 = vmatmul.mubr.msk.bf16.vlgmr.msra.gmra.mrb[20].mxu1 %vm109_vm2, %v645_v8 }
 0x806   :  { %v824_v13 = vpop.f32.mrb[16].mxu0 }
 0x807   :  { %v1058_v14 = vpop.f32.mrb[17].mxu0 }
 0x808   :  { %v827_v15 = vpop.f32.mrb[18].mxu0 }
 0x809   :  { %v1059_v16 = vpop.f32.mrb[19].mxu0 }
 0x80d   :  { %v867_v17 = vpop.f32.mrb[20].mxu1 }
 0x80e   :  { %v868_v18 = vadd.f32 %v867_v17, %v824_v13  ;;  %v1064_v19 = vpop.f32.mrb[21].mxu1 }
 0x80f   :  { %v870_v20 = vpop.f32.mrb[22].mxu1 }
 0x810   :  { %v881_v21 = vadd.f32 %v1263_v26, %v868_v18  ;;  %v1065_v22 = vpop.f32.mrb[23].mxu1 }
 0x812   :  { %v883_v23 = vadd.f32 %v881_v21, %v1169_v4 }
 0x814   :  { %v887_v24 = vsel %vm56_vm1, %v883_v23, 0.0 }
 0x815   :  { %888 = vadd.xlane.f32.xlu0 %v887_v24 }
 0x8a2   :  { %v889_v25 = vpop.xlane.xlu0 %888 }
 0x8a3   :  { %v892_v27 = vmul.f32 0.03125, %v889_v25 }
 0x8a5   :  { %v894_v28 = vsub.f32 %v883_v23, %v892_v27 }
 0x8a7   :  { %v896_v29 = vmul.f32 %v894_v28, %v894_v28 }
 0x8a9   :  { %v900_v30 = vsel %vm56_vm1, %v896_v29, 0.0 }
 0x8aa   :  { %901 = vadd.xlane.f32.xlu0 %v900_v30 }
 0x937   :  { %v902_v31 = vpop.xlane.xlu0 %901 }
 0x938   :  { %v904_v32 = vmul.f32 0.03125, %v902_v31 }
 0x93a   :  { %v906_v33 = vadd.f32 1e-12, %v904_v32 }
 0x93c   :  { %1095 = vrsqrt.f32 %v906_v33 }
 0x946   :  { %v1096_v11 = vpop.eup %1095 }
 0x947   :  { %v910_v34 = vmul.f32 %v1096_v11, %v894_v28 }
 0x949   :  { %v919_v26 = vmul.f32 %v961_v49, %v910_v34 }
 0x94b   :  { %v928_v35 = vadd.f32 %v962_v62, %v919_v26 }
 0x94d   :  { %930 = vst.msk [vmem:[%s1312_s8 + $0x8] sm:$0xff] %vm56_vm1, %v928_v35 }

</bundles_post_ra>
